<compile_context>
chip_gen: v7x
topology: tpu7x:2x2x1
jax: 0.10.0
libtpu: 0.0.40
codegen_flags: <defaults>
</compile_context>

<pallas_src>
import jax
import jax.numpy as jnp
import numpy as np
from jax.experimental import pallas as pl
from jax.experimental.pallas import tpu as pltpu  # noqa: F401


def _sgcsa_kernel(s_ref, w1_ref, b1_ref, w2_ref, b2_ref, out_ref):
    """Fused adjacency normalization + 2-layer GCN (single invocation)."""
    n = s_ref.shape[0]
    hidden = w2_ref.shape[1]
    nn_ = n * n
    f32 = jnp.float32

    # ---- Adjacency stage (VPU / XLU / EUP) ---------------------------------
    s = s_ref[...]                                        # [N, N] head-mean S
    s_sym = s + s.T                                       # S + S^T (symmetric)
    ii = jax.lax.broadcasted_iota(jnp.int32, (n, n), 0)
    jj = jax.lax.broadcasted_iota(jnp.int32, (n, n), 1)
    a_hat = s_sym + (ii == jj).astype(f32)                # A + I
    # A_hat is symmetric: axis=1 (lane) reduce gives the [N,1] factor, axis=0
    # (sublane) reduce gives the [1,N] factor directly -- no vector transpose.
    inv_row = jax.lax.rsqrt(jnp.sum(a_hat, axis=1, keepdims=True))   # [N, 1]
    inv_col = jax.lax.rsqrt(jnp.sum(a_hat, axis=0, keepdims=True))   # [1, N]
    a_norm = a_hat * inv_row * inv_col                    # D^-1/2 A_hat D^-1/2

    # ---- GCN layer 1 (in_features = 1) -------------------------------------
    # T1[b,i] = sum_j A_norm[i,j] S_sym[b,j]; A_norm symmetric => no transpose.
    t1 = jnp.dot(s_sym, a_norm, preferred_element_type=f32)          # [N, N]
    h1 = jnp.maximum(t1[:, :, None] * w1_ref[...] + b1_ref[...], 0.0)  # [N,N,H]
    h1_2d = h1.reshape(nn_, hidden)        # leading-dim merge (layout-compatible)

    # ---- GCN layer 2 aggregation as ONE wide MXU GEMM -----------------------
    # Build A_big = I_N (x) A_norm of shape [N*N, N*N]:
    #   a_tiled[r,c] = A_norm[r mod N, c mod N]   (two tiny MXU matmuls)
    #   a_big        = a_tiled masked to the block diagonal (r//N == c//N)
    # All iota / compare / select ops; no lane-crossing reshapes, no gathers.
    m = n - 1                                              # n is a power of two
    r16 = jax.lax.broadcasted_iota(jnp.int32, (nn_, n), 0)
    k16 = jax.lax.broadcasted_iota(jnp.int32, (nn_, n), 1)
    p = ((r16 & m) == k16).astype(f32)                     # [N*N, N]  p[r,k]=δ(r%N,k)
    k_r = jax.lax.broadcasted_iota(jnp.int32, (n, nn_), 0)
    c16 = jax.lax.broadcasted_iota(jnp.int32, (n, nn_), 1)
    p_t = ((c16 & m) == k_r).astype(f32)                   # [N, N*N]  p_t[k,c]=δ(c%N,k)
    a_tiled = jnp.dot(p, jnp.dot(a_norm, p_t, preferred_element_type=f32),
                      preferred_element_type=f32)          # [N*N, N*N]
    rr = jax.lax.broadcasted_iota(jnp.int32, (nn_, nn_), 0)
    cc = jax.lax.broadcasted_iota(jnp.int32, (nn_, nn_), 1)
    a_big = jnp.where((rr & (-n)) == (cc & (-n)), a_tiled, 0.0)       # block-diag

    # T2[(b,i), f] = sum_j A_norm[i,j] H1[b,j,f]  -> one [N*N,N*N]x[N*N,H] GEMM
    t2 = jnp.dot(a_big, h1_2d, preferred_element_type=f32)            # [N*N, H]
    h2 = jnp.maximum(jnp.dot(t2, w2_ref[...], preferred_element_type=f32)
                     + b2_ref[...], 0.0)                              # [N*N, H]
    out_ref[...] = h2.astype(out_ref.dtype)                # one dense 2-D store


@jax.jit
def sgcsa_forward(attn, w1_t, b1, w2_t, b2):
    """attn: [hwd, hwd, n_heads]  ->  W_aff: [hwd, hwd, hidden_features]."""
    n = attn.shape[0]
    hidden = w1_t.shape[1]
    # TODO(synk): the in-kernel block-diagonal mask uses bitwise tricks that
    # assume hwd is a power of two; generalize with integer // for other sizes.
    assert (n & (n - 1)) == 0, "hwd must be a power of two for this kernel"
    # Head mean folded into the wrapper (4x smaller kernel DMA, no transpose).
    s = jnp.mean(attn.astype(jnp.float32), axis=-1)                   # [N, N]
    out2d = pl.pallas_call(
        _sgcsa_kernel,
        out_shape=jax.ShapeDtypeStruct((n * n, hidden), jnp.float32),
    )(s,
      w1_t.astype(jnp.float32).reshape(1, hidden),
      b1.astype(jnp.float32).reshape(1, hidden),
      w2_t.astype(jnp.float32),
      b2.astype(jnp.float32).reshape(1, hidden))
    return out2d.reshape(n, n, hidden)     # free metadata reshape in XLA


def reference(attn, w1_t, b1, w2_t, b2):
    """Pure-JAX re-implementation of SGCSA_Module.forward for verification."""
    S = attn.mean(-1)
    S_sym = S + S.T
    n = S.shape[0]
    A_hat = S_sym + jnp.eye(n, dtype=S.dtype)
    d = A_hat.sum(axis=1)
    inv = 1.0 / jnp.sqrt(d)
    A_norm = A_hat * inv[:, None] * inv[None, :]
    H = S_sym[..., None]                                   # [N, N, 1]
    H = jax.nn.relu(jnp.einsum("ij,bjf->bif", A_norm, H) @ w1_t + b1)
    H = jax.nn.relu(jnp.einsum("ij,bjf->bif", A_norm, H) @ w2_t + b2)
    return H                                               # squeeze(-1) is a no-op


if __name__ == "__main__":
    N, N_HEADS, HIDDEN = 16, 4, 64       # hwd=16, heads=4, hidden_features=64

    key = jax.random.PRNGKey(0)
    k_attn, k_w1, k_b1, k_w2, k_b2 = jax.random.split(key, 5)

    attn = jax.random.uniform(k_attn, (N, N, N_HEADS), jnp.float32)

    # nn.Linear(1, HIDDEN): weight [HIDDEN, 1], bias [HIDDEN]; stored transposed.
    bound1 = 1.0
    w1_t = jax.random.uniform(k_w1, (1, HIDDEN), jnp.float32, -bound1, bound1)
    b1 = jax.random.uniform(k_b1, (HIDDEN,), jnp.float32, -bound1, bound1)
    # nn.Linear(HIDDEN, HIDDEN)
    bound2 = 1.0 / np.sqrt(HIDDEN)
    w2_t = jax.random.uniform(k_w2, (HIDDEN, HIDDEN), jnp.float32, -bound2, bound2)
    b2 = jax.random.uniform(k_b2, (HIDDEN,), jnp.float32, -bound2, bound2)

    out = sgcsa_forward(attn, w1_t, b1, w2_t, b2)
    out = jax.block_until_ready(out)

    ref = reference(attn, w1_t, b1, w2_t, b2)
    np.testing.assert_allclose(np.asarray(out), np.asarray(ref),
                               rtol=1e-4, atol=1e-4)
    print("KERNEL_OK")
</pallas_src>

<mosaic_0001>
module attributes {stable_mosaic.version = 11 : i64} {
  func.func @_sgcsa_kernel(%arg0: memref<16x16xf32, #tpu.memory_space<vmem>>, %arg1: memref<1x64xf32, #tpu.memory_space<vmem>>, %arg2: memref<1x64xf32, #tpu.memory_space<vmem>>, %arg3: memref<64x64xf32, #tpu.memory_space<vmem>>, %arg4: memref<1x64xf32, #tpu.memory_space<vmem>>, %arg5: memref<256x64xf32, #tpu.memory_space<vmem>>) attributes {dimension_semantics = [], scalar_prefetch = 0 : i64, scratch_operands = 0 : i64, tpu.core_type = #tpu.core_type<tc>} {
    %c0 = arith.constant 0 : index
    %c0_0 = arith.constant 0 : index
    %0 = vector.load %arg0[%c0, %c0_0] : memref<16x16xf32, #tpu.memory_space<vmem>>, vector<16x16xf32>
    %1 = tpu.transpose %0, [1, 0] : vector<16x16xf32> -> vector<16x16xf32>
    %2 = arith.addf %0, %1 : vector<16x16xf32>
    %3 = tpu.iota {dimensions = array<i32: 0>} : vector<16x16xi32>
    %4 = tpu.iota {dimensions = array<i32: 1>} : vector<16x16xi32>
    %5 = arith.cmpi eq, %3, %4 : vector<16x16xi32>
    %6 = arith.extui %5 : vector<16x16xi1> to vector<16x16xi32>
    %7 = arith.sitofp %6 : vector<16x16xi32> to vector<16x16xf32>
    %8 = arith.addf %2, %7 : vector<16x16xf32>
    %cst = arith.constant dense<0.000000e+00> : vector<16xf32>
    %9 = vector.multi_reduction <add>, %8, %cst [1] : vector<16x16xf32> to vector<16xf32>
    %10 = vector.shape_cast %9 : vector<16xf32> to vector<16x1xf32>
    %11 = math.rsqrt %10 : vector<16x1xf32>
    %cst_1 = arith.constant dense<0.000000e+00> : vector<16xf32>
    %12 = vector.multi_reduction <add>, %8, %cst_1 [0] : vector<16x16xf32> to vector<16xf32>
    %13 = vector.shape_cast %12 : vector<16xf32> to vector<1x16xf32>
    %14 = math.rsqrt %13 : vector<1x16xf32>
    %15 = vector.broadcast %11 : vector<16x1xf32> to vector<16x16xf32>
    %16 = arith.mulf %8, %15 : vector<16x16xf32>
    %17 = vector.broadcast %14 : vector<1x16xf32> to vector<16x16xf32>
    %18 = arith.mulf %16, %17 : vector<16x16xf32>
    %cst_2 = arith.constant dense<0.000000e+00> : vector<16x16xf32>
    %19 = tpu.matmul %2, %18, %cst_2 {dimension_numbers = #tpu.dot_dimension_numbers<[1], [0], [0], [1], [0, 0, 1, 1], [], []>} : vector<16x16xf32>, vector<16x16xf32>, vector<16x16xf32> -> vector<16x16xf32>
    %20 = vector.shape_cast %19 : vector<16x16xf32> to vector<16x16x1xf32>
    %c0_3 = arith.constant 0 : index
    %c0_4 = arith.constant 0 : index
    %21 = vector.load %arg1[%c0_3, %c0_4] : memref<1x64xf32, #tpu.memory_space<vmem>>, vector<1x64xf32>
    %22 = vector.shape_cast %21 : vector<1x64xf32> to vector<1x1x64xf32>
    %23 = vector.broadcast %20 : vector<16x16x1xf32> to vector<16x16x64xf32>
    %24 = vector.broadcast %22 : vector<1x1x64xf32> to vector<16x16x64xf32>
    %25 = arith.mulf %23, %24 : vector<16x16x64xf32>
    %c0_5 = arith.constant 0 : index
    %c0_6 = arith.constant 0 : index
    %26 = vector.load %arg2[%c0_5, %c0_6] : memref<1x64xf32, #tpu.memory_space<vmem>>, vector<1x64xf32>
    %27 = vector.shape_cast %26 : vector<1x64xf32> to vector<1x1x64xf32>
    %28 = vector.broadcast %27 : vector<1x1x64xf32> to vector<16x16x64xf32>
    %29 = arith.addf %25, %28 : vector<16x16x64xf32>
    %cst_7 = arith.constant 0.000000e+00 : f32
    %30 = vector.broadcast %cst_7 : f32 to vector<16x16x64xf32>
    %31 = arith.maximumf %29, %30 : vector<16x16x64xf32>
    %32 = vector.shape_cast %31 : vector<16x16x64xf32> to vector<256x64xf32>
    %33 = tpu.iota {dimensions = array<i32: 0>} : vector<256x16xi32>
    %34 = tpu.iota {dimensions = array<i32: 1>} : vector<256x16xi32>
    %c15_i32 = arith.constant 15 : i32
    %35 = vector.broadcast %c15_i32 : i32 to vector<256x16xi32>
    %36 = arith.andi %33, %35 : vector<256x16xi32>
    %37 = arith.cmpi eq, %36, %34 : vector<256x16xi32>
    %38 = arith.extui %37 : vector<256x16xi1> to vector<256x16xi32>
    %39 = arith.sitofp %38 : vector<256x16xi32> to vector<256x16xf32>
    %40 = tpu.iota {dimensions = array<i32: 0>} : vector<16x256xi32>
    %41 = tpu.iota {dimensions = array<i32: 1>} : vector<16x256xi32>
    %c15_i32_8 = arith.constant 15 : i32
    %42 = vector.broadcast %c15_i32_8 : i32 to vector<16x256xi32>
    %43 = arith.andi %41, %42 : vector<16x256xi32>
    %44 = arith.cmpi eq, %43, %40 : vector<16x256xi32>
    %45 = arith.extui %44 : vector<16x256xi1> to vector<16x256xi32>
    %46 = arith.sitofp %45 : vector<16x256xi32> to vector<16x256xf32>
    %cst_9 = arith.constant dense<0.000000e+00> : vector<16x256xf32>
    %47 = tpu.matmul %18, %46, %cst_9 {dimension_numbers = #tpu.dot_dimension_numbers<[1], [0], [0], [1], [0, 0, 1, 1], [], []>} : vector<16x16xf32>, vector<16x256xf32>, vector<16x256xf32> -> vector<16x256xf32>
    %cst_10 = arith.constant dense<0.000000e+00> : vector<256x256xf32>
    %48 = tpu.matmul %39, %47, %cst_10 {dimension_numbers = #tpu.dot_dimension_numbers<[1], [0], [0], [1], [0, 0, 1, 1], [], []>} : vector<256x16xf32>, vector<16x256xf32>, vector<256x256xf32> -> vector<256x256xf32>
    %49 = tpu.iota {dimensions = array<i32: 0>} : vector<256x256xi32>
    %50 = tpu.iota {dimensions = array<i32: 1>} : vector<256x256xi32>
    %c-16_i32 = arith.constant -16 : i32
    %51 = vector.broadcast %c-16_i32 : i32 to vector<256x256xi32>
    %52 = arith.andi %49, %51 : vector<256x256xi32>
    %c-16_i32_11 = arith.constant -16 : i32
    %53 = vector.broadcast %c-16_i32_11 : i32 to vector<256x256xi32>
    %54 = arith.andi %50, %53 : vector<256x256xi32>
    %55 = arith.cmpi eq, %52, %54 : vector<256x256xi32>
    %cst_12 = arith.constant 0.000000e+00 : f32
    %56 = vector.broadcast %cst_12 : f32 to vector<256x256xf32>
    %57 = arith.select %55, %48, %56 : vector<256x256xi1>, vector<256x256xf32>
    %cst_13 = arith.constant dense<0.000000e+00> : vector<256x64xf32>
    %58 = tpu.matmul %57, %32, %cst_13 {dimension_numbers = #tpu.dot_dimension_numbers<[1], [0], [0], [1], [0, 0, 1, 1], [], []>} : vector<256x256xf32>, vector<256x64xf32>, vector<256x64xf32> -> vector<256x64xf32>
    %c0_14 = arith.constant 0 : index
    %c0_15 = arith.constant 0 : index
    %59 = vector.load %arg3[%c0_14, %c0_15] : memref<64x64xf32, #tpu.memory_space<vmem>>, vector<64x64xf32>
    %cst_16 = arith.constant dense<0.000000e+00> : vector<256x64xf32>
    %60 = tpu.matmul %58, %59, %cst_16 {dimension_numbers = #tpu.dot_dimension_numbers<[1], [0], [0], [1], [0, 0, 1, 1], [], []>} : vector<256x64xf32>, vector<64x64xf32>, vector<256x64xf32> -> vector<256x64xf32>
    %c0_17 = arith.constant 0 : index
    %c0_18 = arith.constant 0 : index
    %61 = vector.load %arg4[%c0_17, %c0_18] : memref<1x64xf32, #tpu.memory_space<vmem>>, vector<1x64xf32>
    %62 = vector.broadcast %61 : vector<1x64xf32> to vector<256x64xf32>
    %63 = arith.addf %60, %62 : vector<256x64xf32>
    %cst_19 = arith.constant 0.000000e+00 : f32
    %64 = vector.broadcast %cst_19 : f32 to vector<256x64xf32>
    %65 = arith.maximumf %63, %64 : vector<256x64xf32>
    %c0_20 = arith.constant 0 : index
    %c0_21 = arith.constant 0 : index
    %66 = vector.load %arg5[%c0_20, %c0_21] : memref<256x64xf32, #tpu.memory_space<vmem>>, vector<256x64xf32>
    tpu.vector_store %arg5[%c0_20, %c0_21], %65 {strides = array<i32>} : memref<256x64xf32, #tpu.memory_space<vmem>>, vector<256x64xf32>,
    return
  }
}

</mosaic_0001>

<bundles_post_ra>
// kernel: sgcsa_forward.1
= control target key start
LH: loop header
LB: loop body
LE: loop exit
PB: predicated region body
PF: predicated region fallthrough
CT: control target
= control target key end

     0   :  { %s2944_s0 = inlined_call_operand.vmem [shape: f32[16,16], index: 0, kind: input, shape index: {}]   ;;  %s2945_s1 = inlined_call_operand.vmem [shape: f32[1,64], index: 1, kind: input, shape index: {}]   ;;  %s2946_s2 = inlined_call_operand.vmem [shape: f32[1,64], index: 2, kind: input, shape index: {}]   ;;  %s2947_s3 = inlined_call_operand.vmem [shape: f32[64,64], index: 3, kind: input, shape index: {}]   ;;  %s2948_s4 = inlined_call_operand.vmem [shape: f32[1,64], index: 4, kind: input, shape index: {}]   ;;  %s2949_s5 = inlined_call_operand.hbm [shape: f32[256,64], index: 5, kind: output, shape index: {}]  }
   0x1   :  { %v21_v0 = vld [vmem:[%s2944_s0] sm:$0xff] }
   0x2   :  { %10 = vsyncpa [#allocation3], 0  ;;  %23 = vxpose.xlu0.b32.start [1/2] (short) (narrow) %v21_v0, 16  ;;  %v22_v1 = vld [vmem:[%s2944_s0 + $0x8] sm:$0xff]  ;;  %v2243_v2 = vmov 0.0   ;;  %v57_v3 = vlaneseq  ;;  %vm70_vm1 = vcmask 130048  }
   0x3   :  { %701 = vmatprep.mubr.f32.mxu1 %v2243_v2  ;;  %v2244_v21 = vmov 1.0|1.0   ;;  %v2245_v52 = vmov 0.0|0.0  }
   0x4   :  { %v2286_v4 = vshrl.u32 %v57_v3, 7  ;;  %v2288_v5 = vand.u32 127, %v57_v3 }
   0x6   :  { %24 = vxpose.xlu0.b32.end [2/2] (short) (narrow) %v22_v1, 16  ;;  %vm62_vm0 = vcmp.eq.s32.totalorder %v2286_v4, %v2288_v5  ;;  %v2293_v6 = vadd.s32 8, %v2286_v4  ;;  %v2303_v18 = vadd.s32 128, %v2288_v5  ;;  %v617_v19 = vand.u32 15, %v2288_v5 }
   0x7   :  { %v1871_v8 = vsel %vm62_vm0, 1.0, %v2243_v2  ;;  %v488_v40 = vand.u32 15, %v2286_v4  ;;  %v2321_v46 = vadd.s32 16, %v2286_v4  ;;  %v174_v47 = vsub.s32 0, %v2286_v4 }
   0x8   :  { %vm63_vm2 = vcmp.eq.s32.totalorder %v2293_v6, %v2288_v5  ;;  %v618_v20 = vand.u32 15, %v2303_v18  ;;  %vm619_vm3 = vcmp.eq.s32.totalorder %v617_v19, %v2286_v4  ;;  %vm621_vm4 = vcmp.eq.s32.totalorder %v617_v19, %v2293_v6 }
   0x9   :  { %v1872_v12 = vsel %vm63_vm2, 1.0, %v2243_v2  ;;  %vm2137_vm7 = vmpackc.low %vm621_vm4, %vm619_vm3  ;;  %vm520_vm9 = vcmp.eq.s32.totalorder %v488_v40, %v2288_v5  ;;  %v489_v45 = vand.u32 15, %v2293_v6  ;;  %v490_v50 = vand.u32 15, %v2321_v46 }
   0xa   :  { %vm620_vm5 = vcmp.eq.s32.totalorder %v618_v20, %v2286_v4  ;;  %vm622_vm6 = vcmp.eq.s32.totalorder %v618_v20, %v2293_v6  ;;  %v1877_v48 = vsel %vm520_vm9, 1.0, %v2243_v2  ;;  %v2330_v51 = vadd.s32 24, %v2286_v4 }
   0xb   :  { %vm2135_vm8 = vmpackc.low %vm622_vm6, %vm620_vm5  ;;  %vm521_vm10 = vcmp.eq.s32.totalorder %v489_v45, %v2288_v5  ;;  %v185_v55 = vsub.s32 1, %v2286_v4  ;;  %v218_v56 = vsub.s32 4, %v2286_v4  ;;  %vm522_vm11 = vcmp.eq.s32.totalorder %v490_v50, %v2288_v5 }
   0xc   :  { %2136 = vmatprep.subr.msk.bf16.mxu1 %vm2135_vm8, %v2244_v21  ;;  %v1878_v57 = vsel %vm521_vm10, 1.0, %v2243_v2  ;;  %v491_v58 = vand.u32 15, %v2330_v51  ;;  %v2343_v59 = vadd.s32 32, %v2286_v4  ;;  %v229_v62 = vsub.s32 5, %v2286_v4 }
   0xd   :  { %2138 = vmatpush1.bf16.msk.msra.mxu1 %vm2137_vm7, %v2244_v21  ;;  %v1879_v63 = vsel %vm522_vm11, 1.0, %v2243_v2  ;;  %v207_v20 = vsub.s32 3, %v2286_v4  ;;  %v2438_v40 = vadd.s32 96, %v2286_v4  ;;  %v2460_v50 = vadd.s32 112, %v2286_v4 }
   0xe   :  { %2143 = vmatprep.subr.bf16.mxu1 %v2245_v52  ;;  %vm523_vm12 = vcmp.eq.s32.totalorder %v491_v58, %v2288_v5 }
  0x82   :  { %v39_v7 = vpop.trf.xlu0 }
  0x83   :  { %v55_v9 = vadd.f32 %v39_v7, %v21_v0  ;;  %v492_v0 = vand.u32 15, %v2343_v59  ;;  %v196_v7 = vsub.s32 2, %v2286_v4 }
  0x85   :  { %2064 = vmatprep.mubr.msk.f32.mxu0 %vm70_vm1, %v55_v9  ;;  %v68_v10 = vadd.f32 %v1871_v8, %v55_v9  ;;  %v240_v8 = vsub.s32 6, %v2286_v4  ;;  %v1880_v9 = vsel %vm523_vm12, 1.0, %v2243_v2  ;;  %vm524_vm13 = vcmp.eq.s32.totalorder %v492_v0, %v2288_v5 }
  0x86   :  { %v40_v11 = vpop.trf.xlu0 }
  0x87   :  { %v56_v13 = vadd.f32 %v40_v11, %v22_v1  ;;  %v71_v14 = vsel %vm70_vm1, %v68_v10, 0.0  ;;  %v2359_v1 = vadd.s32 40, %v2286_v4  ;;  %v2374_v11 = vadd.s32 48, %v2286_v4 }
  0x88   :  { %72 = vadd.xlane.f32.xlu1 %v71_v14 }
  0x89   :  { %v69_v15 = vadd.f32 %v1872_v12, %v56_v13 }
  0x8b   :  { %v74_v16 = vsel %vm70_vm1, %v69_v15, 0.0 }
  0x8c   :  { %75 = vadd.xlane.f32.xlu1 %v74_v16  ;;  %v79_v17 = vadd.f32 %v74_v16, %v71_v14  ;;  %v251_v14 = vsub.s32 7, %v2286_v4  ;;  %v494_v16 = vand.u32 15, %v2374_v11 }
  0x8e   :  { %v80_v22 = vrot.slane %v79_v17, 4  ;;  %vm526_vm15 = vcmp.eq.s32.totalorder %v494_v16, %v2288_v5 }
  0x90   :  { %v81_v23 = vadd.f32 %v80_v22, %v79_v17  ;;  %v2385_v17 = vadd.s32 56, %v2286_v4 }
  0x92   :  { %v82_v24 = vrot.slane %v81_v23, 2  ;;  %v495_v22 = vand.u32 15, %v2385_v17 }
  0x94   :  { %v83_v25 = vadd.f32 %v82_v24, %v81_v23  ;;  %v2396_v23 = vadd.s32 64, %v2286_v4  ;;  %vm527_vm0 = vcmp.eq.s32.totalorder %v495_v22, %v2288_v5  ;;  %v2530_v22 = vadd.s32 176, %v2286_v4 }
  0x96   :  { %v84_v26 = vrot.slane %v83_v25, 1 }
  0x98   :  { %v85_v27 = vadd.f32 %v84_v26, %v83_v25  ;;  %v1883_v26 = vsel %vm526_vm15, 1.0, %v2243_v2 }
 0x115   :  { %v73_v28 = vpop.xlane.xlu1 %72 }
 0x116   :  { %2213 = vrsqrt.f32 %v73_v28  ;;  %v2407_v28 = vadd.s32 72, %v2286_v4 }
 0x117   :  { %2215 = vrsqrt.f32 %v85_v27  ;;  %v496_v27 = vand.u32 15, %v2396_v23 }
 0x119   :  { %v76_v29 = vpop.xlane.xlu1 %75  ;;  %vm528_vm2 = vcmp.eq.s32.totalorder %v496_v27, %v2288_v5 }
 0x11a   :  { %2217 = vrsqrt.f32 %v76_v29 }
 0x120   :  { %v2214_v30 = vpop.eup %2213 }
 0x121   :  { %v87_v31 = vmul.f32 %v2214_v30, %v68_v10  ;;  %v2216_v32 = vpop.eup %2215  ;;  %v493_v10 = vand.u32 15, %v2359_v1  ;;  %v1884_v30 = vsel %vm527_vm0, 1.0, %v2243_v2 }
 0x123   :  { %v89_v33 = vmul.f32 %v2216_v32, %v87_v31  ;;  %vm525_vm14 = vcmp.eq.s32.totalorder %v493_v10, %v2288_v5  ;;  %v497_v31 = vand.u32 15, %v2407_v28  ;;  %v2506_v10 = vadd.s32 152, %v2286_v4 }
 0x124   :  { %v2218_v34 = vpop.eup %2217  ;;  %v1882_v21 = vsel %vm525_vm14, 1.0, %v2243_v2 }
 0x125   :  { %1917 = vmatmul.mubr.msk.f32.vlgmr.msra.gmra.mrb[0].mxu1 %vm70_vm1, %v89_v33  ;;  %v88_v35 = vmul.f32 %v2218_v34, %v69_v15  ;;  %v1881_v15 = vsel %vm524_vm13, 1.0, %v2243_v2  ;;  %v1885_v34 = vsel %vm528_vm2, 1.0, %v2243_v2  ;;  %vm529_vm3 = vcmp.eq.s32.totalorder %v497_v31, %v2288_v5 }
 0x126   :  { %707 = vmatprep.mubr.f32.mxu1 %v2243_v2 }
 0x127   :  { %v90_v36 = vmul.f32 %v2216_v32, %v88_v35  ;;  %v2418_v32 = vadd.s32 80, %v2286_v4 }
 0x129   :  { %1918 = vmatmul.mubr.msk.f32.gmra.mrb[2].mxu1 %vm70_vm1, %v90_v36  ;;  %v2131_v37 = vpack.c.bf16 %v90_v36, %v89_v33  ;;  %v498_v35 = vand.u32 15, %v2418_v32  ;;  %v2428_v36 = vadd.s32 88, %v2286_v4 }
 0x12a   :  { %1293 = vmatprep.mubr.f32.mxu1 %v2243_v2 }
 0x12b   :  { %2132 = vmatprep.subr.bf16.mxu0 %v2131_v37  ;;  %vm530_vm4 = vcmp.eq.s32.totalorder %v498_v35, %v2288_v5 }
 0x12c   :  { %2134 = vmatpush3.bf16.msra.mxu0 %v2131_v37 }
 0x12f   :  { %2065 = vmatmul.mubr.msk.f32.vlgmr.msra.gmra.mrb[0].mxu0 %vm70_vm1, %v56_v13 }
 0x130   :  { %874 = vmatprep.mubr.f32.mxu0 %v2243_v2 }
 0x1f8   :  { %v703_v38 = vpop.f32.mrb[0].mxu1 }
 0x1f9   :  { %v705_v39 = vpop.f32.mrb[1].mxu1 }
 0x1fc   :  { %v709_v41 = vpop.f32.mrb[2].mxu1 }
 0x1fd   :  { %v2141_v42 = vpack.c.bf16 %v709_v41, %v703_v38  ;;  %v711_v43 = vpop.f32.mrb[3].mxu1  ;;  %v1886_v38 = vsel %vm529_vm3, 1.0, %v2243_v2 }
 0x1fe   :  { %v2139_v44 = vpack.c.bf16 %v711_v43, %v705_v39  ;;  %v499_v39 = vand.u32 15, %v2428_v36  ;;  %v500_v43 = vand.u32 15, %v2438_v40 }
 0x200   :  { %2140 = vmatprep.subr.bf16.mxu0 %v2139_v44  ;;  %vm531_vm5 = vcmp.eq.s32.totalorder %v499_v39, %v2288_v5  ;;  %v2449_v44 = vadd.s32 104, %v2286_v4  ;;  %vm532_vm6 = vcmp.eq.s32.totalorder %v500_v43, %v2288_v5 }
 0x201   :  { %2142 = vmatpush1.bf16.msra.mxu0 %v2141_v42  ;;  %v1887_v42 = vsel %vm530_vm4, 1.0, %v2243_v2 }
 0x202   :  { %v2325_v49 = vpop.f32.mrb[0].mxu0 }
 0x203   :  { %v163_v53 = vpop.f32.mrb[1].mxu0  ;;  %v263_v25 = vrot.slane %v2325_v49, %v174_v47  ;;  %v274_v29 = vrot.slane %v2325_v49, %v185_v55  ;;  %v285_v33 = vrot.slane %v2325_v49, %v196_v7  ;;  %v296_v37 = vrot.slane %v2325_v49, %v207_v20 }
 0x204   :  { %1919 = vmatmul.mubr.msk.f32.vlgmr.msra.gmra.mrb[2].mxu0 %vm70_vm1, %v1877_v48  ;;  %v175_v54 = vrot.slane %v163_v53, %v174_v47  ;;  %v186_v60 = vrot.slane %v163_v53, %v185_v55  ;;  %v2350_v61 = vrot.slane %v163_v53, %v218_v56  ;;  %v2364_v3 = vrot.slane %v163_v53, %v229_v62 }
 0x205   :  { %880 = vmatprep.mubr.f32.mxu0 %v2243_v2  ;;  %v197_v12 = vrot.slane %v163_v53, %v196_v7  ;;  %v241_v13 = vrot.slane %v163_v53, %v240_v8  ;;  %v252_v19 = vrot.slane %v163_v53, %v251_v14  ;;  %v208_v24 = vrot.slane %v163_v53, %v207_v20 }
 0x206   :  { %181 = vbcast.lane.b32.xlu1 %v175_v54, 264  ;;  %177 = vbcast.lane.b32.xlu0 %v175_v54, 256  ;;  %v307_v41 = vrot.slane %v2325_v49, %v218_v56  ;;  %v318_v45 = vrot.slane %v2325_v49, %v229_v62  ;;  %v1888_v47 = vsel %vm531_vm5, 1.0, %v2243_v2  ;;  %v501_v48 = vand.u32 15, %v2449_v44 }
 0x207   :  { %v329_v53 = vrot.slane %v2325_v49, %v240_v8  ;;  %v1889_v54 = vsel %vm532_vm6, 1.0, %v2243_v2  ;;  %v502_v55 = vand.u32 15, %v2460_v50  ;;  %v2471_v56 = vadd.s32 120, %v2286_v4 }
 0x208   :  { %1920 = vmatmul.mubr.msk.f32.gmra.mrb[4].mxu0 %vm70_vm1, %v1878_v57  ;;  %vm533_vm7 = vcmp.eq.s32.totalorder %v501_v48, %v2288_v5  ;;  %v340_v57 = vrot.slane %v2325_v49, %v251_v14  ;;  %v2498_v7 = vadd.s32 144, %v2286_v4  ;;  %v2514_v14 = vadd.s32 160, %v2286_v4 }
 0x209   :  { %886 = vmatprep.mubr.f32.mxu0 %v2243_v2  ;;  %v1890_v58 = vsel %vm533_vm7, 1.0, %v2243_v2  ;;  %vm534_vm8 = vcmp.eq.s32.totalorder %v502_v55, %v2288_v5 }
 0x20a   :  { %188 = vbcast.lane.b32.xlu1 %v186_v60, 256  ;;  %221 = vbcast.lane.b32.xlu0 %v2350_v61, 256  ;;  %v1891_v62 = vsel %vm534_vm8, 1.0, %v2243_v2  ;;  %v508_v16 = vand.u32 15, %v2514_v14 }
 0x20c   :  { %1921 = vmatmul.mubr.msk.f32.gmra.mrb[6].mxu0 %vm70_vm1, %v1879_v63  ;;  %v2490_v63 = vadd.s32 136, %v2286_v4  ;;  %vm540_vm14 = vcmp.eq.s32.totalorder %v508_v16, %v2288_v5 }
 0x20d   :  { %892 = vmatprep.mubr.f32.mxu0 %v2243_v2 }
 0x20e   :  { %192 = vbcast.lane.b32.xlu1 %v186_v60, 264  ;;  %232 = vbcast.lane.b32.xlu0 %v2364_v3, 256  ;;  %v503_v60 = vand.u32 15, %v2471_v56 }
 0x210   :  { %1922 = vmatmul.mubr.msk.f32.gmra.mrb[8].mxu0 %vm70_vm1, %v1880_v9  ;;  %vm535_vm9 = vcmp.eq.s32.totalorder %v503_v60, %v2288_v5  ;;  %v506_v9 = vand.u32 15, %v2498_v7 }
 0x211   :  { %898 = vmatprep.mubr.f32.mxu0 %v2243_v2  ;;  %v1892_v0 = vsel %vm535_vm9, 1.0, %v2243_v2 }
 0x212   :  { %199 = vbcast.lane.b32.xlu1 %v197_v12, 256  ;;  %243 = vbcast.lane.b32.xlu0 %v241_v13, 256  ;;  %vm538_vm12 = vcmp.eq.s32.totalorder %v506_v9, %v2288_v5  ;;  %v2618_v9 = vld [vmem:[%s2946_s2] ss:$0 sm:$0xff] }
 0x214   :  { %1923 = vmatmul.mubr.msk.f32.gmra.mrb[10].mxu0 %vm70_vm1, %v1881_v15  ;;  %v1895_v15 = vsel %vm538_vm12, 1.0, %v2243_v2 }
 0x215   :  { %904 = vmatprep.mubr.f32.mxu0 %v2243_v2 }
 0x216   :  { %203 = vbcast.lane.b32.xlu1 %v197_v12, 264  ;;  %254 = vbcast.lane.b32.xlu0 %v252_v19, 256 }
 0x218   :  { %1924 = vmatmul.mubr.msk.f32.gmra.mrb[12].mxu0 %vm70_vm1, %v1882_v21 }
 0x219   :  { %910 = vmatprep.mubr.f32.mxu0 %v2243_v2 }
 0x21a   :  { %210 = vbcast.lane.b32.xlu1 %v208_v24, 256  ;;  %265 = vbcast.lane.b32.xlu0 %v263_v25, 256 }
 0x21c   :  { %1925 = vmatmul.mubr.msk.f32.gmra.mrb[14].mxu0 %vm70_vm1, %v1883_v26  ;;  %v2538_v26 = vadd.s32 184, %v2286_v4 }
 0x21d   :  { %916 = vmatprep.mubr.f32.mxu0 %v2243_v2 }
 0x21e   :  { %214 = vbcast.lane.b32.xlu1 %v208_v24, 264  ;;  %276 = vbcast.lane.b32.xlu0 %v274_v29, 256  ;;  %v1897_v24 = vsel %vm540_vm14, 1.0, %v2243_v2 }
 0x220   :  { %1926 = vmatmul.mubr.msk.f32.gmra.mrb[16].mxu0 %vm70_vm1, %v1884_v30  ;;  %v2546_v30 = vadd.s32 192, %v2286_v4 }
 0x221   :  { %922 = vmatprep.mubr.f32.mxu0 %v2243_v2 }
 0x222   :  { %225 = vbcast.lane.b32.xlu1 %v2350_v61, 264  ;;  %287 = vbcast.lane.b32.xlu0 %v285_v33, 256  ;;  %v2482_v61 = vadd.s32 128, %v2286_v4 }
 0x224   :  { %1927 = vmatmul.mubr.msk.f32.gmra.mrb[18].mxu0 %vm70_vm1, %v1885_v34  ;;  %v504_v49 = vand.u32 15, %v2482_v61  ;;  %v2554_v34 = vadd.s32 200, %v2286_v4 }
 0x225   :  { %928 = vmatprep.mubr.f32.mxu0 %v2243_v2 }
 0x226   :  { %236 = vbcast.lane.b32.xlu1 %v2364_v3, 264  ;;  %298 = vbcast.lane.b32.xlu0 %v296_v37, 256  ;;  %vm536_vm10 = vcmp.eq.s32.totalorder %v504_v49, %v2288_v5  ;;  %v505_v3 = vand.u32 15, %v2490_v63  ;;  %v2602_v49 = vadd.s32 248, %v2286_v4 }
 0x227   :  { %v1893_v8 = vsel %vm536_vm10, 1.0, %v2243_v2 }
 0x228   :  { %1928 = vmatmul.mubr.msk.f32.gmra.mrb[20].mxu0 %vm70_vm1, %v1886_v38  ;;  %vm537_vm11 = vcmp.eq.s32.totalorder %v505_v3, %v2288_v5  ;;  %v2562_v38 = vadd.s32 208, %v2286_v4  ;;  %v2610_v3 = vld [vmem:[%s2945_s1] ss:$0 sm:$0xff] }
 0x229   :  { %934 = vmatprep.mubr.f32.mxu0 %v2243_v2  ;;  %v1894_v12 = vsel %vm537_vm11, 1.0, %v2243_v2 }
 0x22a   :  { %247 = vbcast.lane.b32.xlu1 %v241_v13, 264  ;;  %309 = vbcast.lane.b32.xlu0 %v307_v41, 256  ;;  %v507_v13 = vand.u32 15, %v2506_v10 }
 0x22c   :  { %1929 = vmatmul.mubr.msk.f32.gmra.mrb[22].mxu0 %vm70_vm1, %v1887_v42  ;;  %vm539_vm13 = vcmp.eq.s32.totalorder %v507_v13, %v2288_v5  ;;  %v2570_v42 = vadd.s32 216, %v2286_v4 }
 0x22d   :  { %940 = vmatprep.mubr.f32.mxu0 %v2243_v2  ;;  %v1896_v20 = vsel %vm539_vm13, 1.0, %v2243_v2 }
 0x22e   :  { %258 = vbcast.lane.b32.xlu1 %v252_v19, 264  ;;  %320 = vbcast.lane.b32.xlu0 %v318_v45, 256  ;;  %v2522_v19 = vadd.s32 168, %v2286_v4 }
 0x230   :  { %1930 = vmatmul.mubr.msk.f32.gmra.mrb[24].mxu0 %vm70_vm1, %v1888_v47  ;;  %v509_v21 = vand.u32 15, %v2522_v19  ;;  %v2578_v47 = vadd.s32 224, %v2286_v4 }
 0x231   :  { %946 = vmatprep.mubr.f32.mxu0 %v2243_v2 }
 0x232   :  { %269 = vbcast.lane.b32.xlu1 %v263_v25, 264  ;;  %331 = vbcast.lane.b32.xlu0 %v329_v53, 256  ;;  %vm541_vm15 = vcmp.eq.s32.totalorder %v509_v21, %v2288_v5  ;;  %v510_v25 = vand.u32 15, %v2530_v22 }
 0x233   :  { %v1898_v27 = vsel %vm541_vm15, 1.0, %v2243_v2 }
 0x234   :  { %1931 = vmatmul.mubr.msk.f32.gmra.mrb[26].mxu0 %vm70_vm1, %v1889_v54  ;;  %vm542_vm0 = vcmp.eq.s32.totalorder %v510_v25, %v2288_v5  ;;  %v2586_v54 = vadd.s32 232, %v2286_v4 }
 0x235   :  { %952 = vmatprep.mubr.f32.mxu0 %v2243_v2  ;;  %v1899_v31 = vsel %vm542_vm0, 1.0, %v2243_v2 }
 0x236   :  { %280 = vbcast.lane.b32.xlu1 %v274_v29, 264  ;;  %342 = vbcast.lane.b32.xlu0 %v340_v57, 256  ;;  %v511_v29 = vand.u32 15, %v2538_v26 }
 0x238   :  { %1932 = vmatmul.mubr.msk.f32.gmra.mrb[28].mxu0 %vm70_vm1, %v1890_v58  ;;  %vm543_vm2 = vcmp.eq.s32.totalorder %v511_v29, %v2288_v5  ;;  %v2594_v58 = vadd.s32 240, %v2286_v4 }
 0x239   :  { %958 = vmatprep.mubr.f32.mxu0 %v2243_v2  ;;  %v1900_v35 = vsel %vm543_vm2, 1.0, %v2243_v2 }
 0x23a   :  { %291 = vbcast.lane.b32.xlu1 %v285_v33, 264  ;;  %v512_v33 = vand.u32 15, %v2546_v30 }
 0x23c   :  { %1933 = vmatmul.mubr.msk.f32.gmra.mrb[30].mxu0 %vm70_vm1, %v1891_v62  ;;  %vm544_vm3 = vcmp.eq.s32.totalorder %v512_v33, %v2288_v5  ;;  %v518_v62 = vand.u32 15, %v2594_v58 }
 0x23d   :  { %964 = vmatprep.mubr.f32.mxu0 %v2243_v2  ;;  %v1901_v39 = vsel %vm544_vm3, 1.0, %v2243_v2 }
 0x23e   :  { %302 = vbcast.lane.b32.xlu1 %v296_v37, 264  ;;  %v513_v37 = vand.u32 15, %v2554_v34  ;;  %vm550_vm9 = vcmp.eq.s32.totalorder %v518_v62, %v2288_v5 }
 0x240   :  { %1934 = vmatmul.mubr.msk.f32.gmra.mrb[32].mxu0 %vm70_vm1, %v1892_v0  ;;  %vm545_vm4 = vcmp.eq.s32.totalorder %v513_v37, %v2288_v5 }
 0x241   :  { %970 = vmatprep.mubr.f32.mxu0 %v2243_v2  ;;  %v1902_v43 = vsel %vm545_vm4, 1.0, %v2243_v2 }
 0x242   :  { %313 = vbcast.lane.b32.xlu1 %v307_v41, 264  ;;  %v514_v41 = vand.u32 15, %v2562_v38 }
 0x244   :  { %1935 = vmatmul.mubr.msk.f32.gmra.mrb[34].mxu0 %vm70_vm1, %v1893_v8  ;;  %vm546_vm5 = vcmp.eq.s32.totalorder %v514_v41, %v2288_v5  ;;  %v519_v8 = vand.u32 15, %v2602_v49 }
 0x245   :  { %976 = vmatprep.mubr.f32.mxu0 %v2243_v2  ;;  %v1903_v48 = vsel %vm546_vm5, 1.0, %v2243_v2 }
 0x246   :  { %324 = vbcast.lane.b32.xlu1 %v318_v45, 264  ;;  %v515_v45 = vand.u32 15, %v2570_v42  ;;  %vm551_vm10 = vcmp.eq.s32.totalorder %v519_v8, %v2288_v5 }
 0x248   :  { %1936 = vmatmul.mubr.msk.f32.gmra.mrb[36].mxu0 %vm70_vm1, %v1894_v12  ;;  %vm547_vm6 = vcmp.eq.s32.totalorder %v515_v45, %v2288_v5 }
 0x249   :  { %982 = vmatprep.mubr.f32.mxu0 %v2243_v2  ;;  %v1904_v55 = vsel %vm547_vm6, 1.0, %v2243_v2 }
 0x24a   :  { %335 = vbcast.lane.b32.xlu1 %v329_v53, 264  ;;  %v516_v53 = vand.u32 15, %v2578_v47 }
 0x24c   :  { %1937 = vmatmul.mubr.msk.f32.gmra.mrb[38].mxu0 %vm70_vm1, %v1895_v15  ;;  %vm548_vm7 = vcmp.eq.s32.totalorder %v516_v53, %v2288_v5 }
 0x24d   :  { %988 = vmatprep.mubr.f32.mxu0 %v2243_v2  ;;  %v1905_v60 = vsel %vm548_vm7, 1.0, %v2243_v2 }
 0x24e   :  { %346 = vbcast.lane.b32.xlu1 %v340_v57, 264  ;;  %v517_v57 = vand.u32 15, %v2586_v54 }
 0x250   :  { %1938 = vmatmul.mubr.msk.f32.gmra.mrb[40].mxu0 %vm70_vm1, %v1896_v20  ;;  %vm549_vm8 = vcmp.eq.s32.totalorder %v517_v57, %v2288_v5  ;;  %v1907_v20 = vsel %vm550_vm9, 1.0, %v2243_v2 }
 0x251   :  { %994 = vmatprep.mubr.f32.mxu0 %v2243_v2  ;;  %v1906_v0 = vsel %vm549_vm8, 1.0, %v2243_v2 }
 0x254   :  { %1939 = vmatmul.mubr.msk.f32.gmra.mrb[42].mxu0 %vm70_vm1, %v1897_v24 }
 0x255   :  { %1000 = vmatprep.mubr.f32.mxu0 %v2243_v2 }
 0x258   :  { %1940 = vmatmul.mubr.msk.f32.gmra.mrb[44].mxu0 %vm70_vm1, %v1898_v27 }
 0x259   :  { %1006 = vmatprep.mubr.f32.mxu0 %v2243_v2 }
 0x25c   :  { %1941 = vmatmul.mubr.msk.f32.gmra.mrb[46].mxu0 %vm70_vm1, %v1899_v31 }
 0x25d   :  { %1012 = vmatprep.mubr.f32.mxu0 %v2243_v2 }
 0x260   :  { %1942 = vmatmul.mubr.msk.f32.gmra.mrb[48].mxu0 %vm70_vm1, %v1900_v35  ;;  %v1908_v35 = vsel %vm551_vm10, 1.0, %v2243_v2 }
 0x261   :  { %1018 = vmatprep.mubr.f32.mxu0 %v2243_v2 }
 0x264   :  { %1943 = vmatmul.mubr.msk.f32.gmra.mrb[50].mxu0 %vm70_vm1, %v1901_v39 }
 0x265   :  { %1024 = vmatprep.mubr.f32.mxu0 %v2243_v2 }
 0x268   :  { %1944 = vmatmul.mubr.msk.f32.gmra.mrb[52].mxu0 %vm70_vm1, %v1902_v43 }
 0x269   :  { %1030 = vmatprep.mubr.f32.mxu0 %v2243_v2 }
 0x26c   :  { %1945 = vmatmul.mubr.msk.f32.gmra.mrb[54].mxu0 %vm70_vm1, %v1903_v48 }
 0x26d   :  { %1036 = vmatprep.mubr.f32.mxu0 %v2243_v2 }
 0x270   :  { %1946 = vmatmul.mubr.msk.f32.gmra.mrb[56].mxu0 %vm70_vm1, %v1904_v55 }
 0x271   :  { %1042 = vmatprep.mubr.f32.mxu0 %v2243_v2 }
 0x274   :  { %1947 = vmatmul.mubr.msk.f32.gmra.mrb[58].mxu0 %vm70_vm1, %v1905_v60 }
 0x275   :  { %1048 = vmatprep.mubr.f32.mxu0 %v2243_v2 }
 0x278   :  { %1948 = vmatmul.mubr.msk.f32.gmra.mrb[60].mxu0 %vm70_vm1, %v1906_v0  ;;  %v182_v12 = vpop.permute.xlu1 %181  ;;  %v178_v13 = vpop.permute.xlu0 %177 }
 0x279   :  { %v356_v15 = vmul.f32 %v2610_v3, %v182_v12  ;;  %v355_v16 = vmul.f32 %v2610_v3, %v178_v13  ;;  %1054 = vmatprep.mubr.f32.mxu0 %v2243_v2 }
 0x27b   :  { %v395_v21 = vadd.f32 %v2618_v9, %v356_v15  ;;  %v394_v24 = vadd.f32 %v2618_v9, %v355_v16 }
 0x27c   :  { %1949 = vmatmul.mubr.msk.f32.gmra.mrb[62].mxu0 %vm70_vm1, %v1907_v20  ;;  %v189_v25 = vpop.permute.xlu1 %188  ;;  %v222_v27 = vpop.permute.xlu0 %221 }
 0x27d   :  { %v427_v29 = vmax.f32 %v395_v21, 0.0  ;;  %v426_v31 = vmax.f32 %v394_v24, 0.0  ;;  %v357_v33 = vmul.f32 %v2610_v3, %v189_v25  ;;  %1060 = vmatprep.mubr.f32.mxu0 %v2243_v2 }
 0x27f   :  { %v2144_v37 = vpack.c.bf16 %v427_v29, %v426_v31  ;;  %v396_v43 = vadd.f32 %v2618_v9, %v357_v33  ;;  %v363_v31 = vmul.f32 %v2610_v3, %v222_v27 }
 0x280   :  { %1950 = vmatmul.mubr.msk.f32.gmra.mrb[64].mxu0 %vm70_vm1, %v1908_v35  ;;  %v193_v39 = vpop.permute.xlu1 %192  ;;  %v233_v41 = vpop.permute.xlu0 %232 }
 0x281   :  { %v358_v45 = vmul.f32 %v2610_v3, %v193_v39  ;;  %2145 = vmatpush1.bf16.msra.mxu1 %v2144_v37  ;;  %v428_v57 = vmax.f32 %v396_v43, 0.0 }
 0x282   :  { %2146 = vmatprep.subr.bf16.mxu1 %v2245_v52 }
 0x283   :  { %v397_v48 = vadd.f32 %v2618_v9, %v358_v45  ;;  %v402_v45 = vadd.f32 %v2618_v9, %v363_v31 }
 0x284   :  { %v200_v53 = vpop.permute.xlu1 %199  ;;  %v244_v55 = vpop.permute.xlu0 %243 }
 0x285   :  { %v429_v60 = vmax.f32 %v397_v48, 0.0  ;;  %v359_v62 = vmul.f32 %v2610_v3, %v200_v53  ;;  %v365_v53 = vmul.f32 %v2610_v3, %v233_v41 }
 0x287   :  { %v2147_v0 = vpack.c.bf16 %v429_v60, %v428_v57  ;;  %v398_v12 = vadd.f32 %v2618_v9, %v359_v62 }
 0x288   :  { %v204_v8 = vpop.permute.xlu1 %203  ;;  %v255_v15 = vpop.permute.xlu0 %254 }
 0x289   :  { %v360_v13 = vmul.f32 %v2610_v3, %v204_v8  ;;  %2148 = vmatpush1.bf16.msra.mxu1 %v2147_v0  ;;  %v430_v21 = vmax.f32 %v398_v12, 0.0  ;;  %v434_v12 = vmax.f32 %v402_v45, 0.0 }
 0x28a   :  { %2149 = vmatprep.subr.bf16.mxu1 %v2245_v52 }
 0x28b   :  { %v399_v16 = vadd.f32 %v2618_v9, %v360_v13 }
 0x28c   :  { %v211_v20 = vpop.permute.xlu1 %210  ;;  %v266_v33 = vpop.permute.xlu0 %265 }
 0x28d   :  { %v431_v24 = vmax.f32 %v399_v16, 0.0  ;;  %v361_v25 = vmul.f32 %v2610_v3, %v211_v20  ;;  %v404_v16 = vadd.f32 %v2618_v9, %v365_v53  ;;  %v367_v20 = vmul.f32 %v2610_v3, %v244_v55 }
 0x28f   :  { %v2150_v29 = vpack.c.bf16 %v431_v24, %v430_v21  ;;  %v400_v37 = vadd.f32 %v2618_v9, %v361_v25 }
 0x290   :  { %v215_v35 = vpop.permute.xlu1 %214  ;;  %v277_v62 = vpop.permute.xlu0 %276 }
 0x291   :  { %v362_v39 = vmul.f32 %v2610_v3, %v215_v35  ;;  %2151 = vmatpush1.bf16.msra.mxu1 %v2150_v29  ;;  %v432_v57 = vmax.f32 %v400_v37, 0.0  ;;  %v369_v29 = vmul.f32 %v2610_v3, %v255_v15  ;;  %v436_v37 = vmax.f32 %v404_v16, 0.0 }
 0x292   :  { %2152 = vmatprep.subr.bf16.mxu1 %v2245_v52  ;;  %v371_v15 = vmul.f32 %v2610_v3, %v266_v33 }
 0x293   :  { %v401_v43 = vadd.f32 %v2618_v9, %v362_v39  ;;  %v406_v39 = vadd.f32 %v2618_v9, %v367_v20  ;;  %v408_v53 = vadd.f32 %v2618_v9, %v369_v29 }
 0x294   :  { %v226_v48 = vpop.permute.xlu1 %225  ;;  %v288_v31 = vpop.permute.xlu0 %287 }
 0x295   :  { %v433_v60 = vmax.f32 %v401_v43, 0.0  ;;  %v364_v27 = vmul.f32 %v2610_v3, %v226_v48  ;;  %v440_v16 = vmax.f32 %v408_v53, 0.0 }
 0x297   :  { %v2153_v0 = vpack.c.bf16 %v433_v60, %v432_v57  ;;  %v403_v8 = vadd.f32 %v2618_v9, %v364_v27  ;;  %v438_v60 = vmax.f32 %v406_v39, 0.0 }
 0x298   :  { %v237_v13 = vpop.permute.xlu1 %236 }
 0x299   :  { %v435_v21 = vmax.f32 %v403_v8, 0.0  ;;  %v366_v24 = vmul.f32 %v2610_v3, %v237_v13  ;;  %2154 = vmatpush1.bf16.msra.mxu1 %v2153_v0  ;;  %v299_v8 = vpop.permute.xlu0 %298 }
 0x29a   :  { %2155 = vmatprep.subr.bf16.mxu1 %v2245_v52 }
 0x29b   :  { %v2156_v41 = vpack.c.bf16 %v435_v21, %v434_v12  ;;  %v405_v25 = vadd.f32 %v2618_v9, %v366_v24  ;;  %v410_v21 = vadd.f32 %v2618_v9, %v371_v15  ;;  %v373_v24 = vmul.f32 %v2610_v3, %v277_v62 }
 0x29c   :  { %v248_v35 = vpop.permute.xlu1 %247 }
 0x29d   :  { %v437_v43 = vmax.f32 %v405_v25, 0.0  ;;  %v368_v45 = vmul.f32 %v2610_v3, %v248_v35  ;;  %2157 = vmatpush1.bf16.msra.mxu1 %v2156_v41  ;;  %v375_v35 = vmul.f32 %v2610_v3, %v288_v31  ;;  %v377_v31 = vmul.f32 %v2610_v3, %v299_v8 }
 0x29e   :  { %2158 = vmatprep.subr.bf16.mxu1 %v2245_v52 }
 0x29f   :  { %v2159_v55 = vpack.c.bf16 %v437_v43, %v436_v37  ;;  %v407_v48 = vadd.f32 %v2618_v9, %v368_v45  ;;  %v310_v37 = vpop.permute.xlu0 %309  ;;  %v442_v43 = vmax.f32 %v410_v21, 0.0  ;;  %v412_v45 = vadd.f32 %v2618_v9, %v373_v24 }
 0x2a0   :  { %v259_v57 = vpop.permute.xlu1 %258  ;;  %v416_v24 = vadd.f32 %v2618_v9, %v377_v31 }
 0x2a1   :  { %v439_v27 = vmax.f32 %v407_v48, 0.0  ;;  %v370_v0 = vmul.f32 %v2610_v3, %v259_v57  ;;  %2160 = vmatpush1.bf16.msra.mxu1 %v2159_v55  ;;  %v414_v57 = vadd.f32 %v2618_v9, %v375_v35  ;;  %v444_v15 = vmax.f32 %v412_v45, 0.0 }
 0x2a2   :  { %2161 = vmatprep.subr.bf16.mxu1 %v2245_v52  ;;  %v448_v45 = vmax.f32 %v416_v24, 0.0 }
 0x2a3   :  { %v2162_v12 = vpack.c.bf16 %v439_v27, %v438_v60  ;;  %v409_v13 = vadd.f32 %v2618_v9, %v370_v0 }
 0x2a4   :  { %v270_v20 = vpop.permute.xlu1 %269 }
 0x2a5   :  { %v441_v41 = vmax.f32 %v409_v13, 0.0  ;;  %v372_v25 = vmul.f32 %v2610_v3, %v270_v20  ;;  %2163 = vmatpush1.bf16.msra.mxu1 %v2162_v12  ;;  %v321_v12 = vpop.permute.xlu0 %320  ;;  %v446_v20 = vmax.f32 %v414_v57, 0.0 }
 0x2a6   :  { %2164 = vmatprep.subr.bf16.mxu1 %v2245_v52  ;;  %v381_v35 = vmul.f32 %v2610_v3, %v321_v12 }
 0x2a7   :  { %v2165_v33 = vpack.c.bf16 %v441_v41, %v440_v16  ;;  %v411_v29 = vadd.f32 %v2618_v9, %v372_v25  ;;  %v379_v41 = vmul.f32 %v2610_v3, %v310_v37 }
 0x2a8   :  { %v281_v39 = vpop.permute.xlu1 %280  ;;  %v420_v57 = vadd.f32 %v2618_v9, %v381_v35 }
 0x2a9   :  { %v443_v55 = vmax.f32 %v411_v29, 0.0  ;;  %v374_v48 = vmul.f32 %v2610_v3, %v281_v39  ;;  %2166 = vmatpush1.bf16.msra.mxu1 %v2165_v33  ;;  %v332_v39 = vpop.permute.xlu0 %331 }
 0x2aa   :  { %2167 = vmatprep.subr.bf16.mxu1 %v2245_v52  ;;  %v383_v31 = vmul.f32 %v2610_v3, %v332_v39 }
 0x2ab   :  { %v2168_v62 = vpack.c.bf16 %v443_v55, %v442_v43  ;;  %v413_v53 = vadd.f32 %v2618_v9, %v374_v48  ;;  %v418_v55 = vadd.f32 %v2618_v9, %v379_v41 }
 0x2ac   :  { %v292_v60 = vpop.permute.xlu1 %291  ;;  %v422_v24 = vadd.f32 %v2618_v9, %v383_v31  ;;  %v1455_v31 = vld [vmem:[%s2947_s3 + $0x8] sm:$0xff] }
 0x2ad   :  { %v445_v27 = vmax.f32 %v413_v53, 0.0  ;;  %v376_v0 = vmul.f32 %v2610_v3, %v292_v60  ;;  %2169 = vmatpush1.bf16.msra.mxu1 %v2168_v62  ;;  %v343_v12 = vpop.permute.xlu0 %342 }
 0x2ae   :  { %2170 = vmatprep.subr.bf16.mxu1 %v2245_v52  ;;  %v385_v41 = vmul.f32 %v2610_v3, %v343_v12  ;;  %v454_v39 = vmax.f32 %v422_v24, 0.0  ;;  %v1458_v12 = vld [vmem:[%s2947_s3 + $0x20] sm:$0xff] }
 0x2af   :  { %v2171_v13 = vpack.c.bf16 %v445_v27, %v444_v15  ;;  %v415_v16 = vadd.f32 %v2618_v9, %v376_v0  ;;  %v450_v15 = vmax.f32 %v418_v55, 0.0 }
 0x2b0   :  { %v303_v21 = vpop.permute.xlu1 %302 }
 0x2b1   :  { %v447_v25 = vmax.f32 %v415_v16, 0.0  ;;  %v378_v33 = vmul.f32 %v2610_v3, %v303_v21  ;;  %2172 = vmatpush1.bf16.msra.mxu1 %v2171_v13 }
 0x2b2   :  { %2173 = vmatprep.subr.bf16.mxu1 %v2245_v52 }
 0x2b3   :  { %v2174_v8 = vpack.c.bf16 %v447_v25, %v446_v20  ;;  %v417_v29 = vadd.f32 %v2618_v9, %v378_v33  ;;  %v452_v20 = vmax.f32 %v420_v57, 0.0 }
 0x2b4   :  { %v314_v43 = vpop.permute.xlu1 %313 }
 0x2b5   :  { %v449_v48 = vmax.f32 %v417_v29, 0.0  ;;  %v380_v62 = vmul.f32 %v2610_v3, %v314_v43  ;;  %2175 = vmatpush1.bf16.msra.mxu1 %v2174_v8  ;;  %v424_v43 = vadd.f32 %v2618_v9, %v385_v41  ;;  %v1070_v41 = vand.u32 4294967280, %v2330_v51 }
 0x2b6   :  { %2176 = vmatprep.subr.bf16.mxu1 %v2245_v52  ;;  %v1072_v51 = vand.u32 4294967280, %v2359_v1 }
 0x2b7   :  { %v2177_v37 = vpack.c.bf16 %v449_v48, %v448_v45  ;;  %v419_v53 = vadd.f32 %v2618_v9, %v380_v62 }
 0x2b8   :  { %v325_v60 = vpop.permute.xlu1 %324 }
 0x2b9   :  { %v451_v27 = vmax.f32 %v419_v53, 0.0  ;;  %v382_v0 = vmul.f32 %v2610_v3, %v325_v60  ;;  %2178 = vmatpush1.bf16.msra.mxu1 %v2177_v37  ;;  %v456_v37 = vmax.f32 %v424_v43, 0.0  ;;  %v1067_v60 = vand.u32 4294967280, %v2286_v4 }
 0x2ba   :  { %2179 = vmatprep.subr.bf16.mxu1 %v2245_v52  ;;  %v1073_v43 = vand.u32 4294967280, %v2374_v11 }
 0x2bb   :  { %v2180_v13 = vpack.c.bf16 %v451_v27, %v450_v15  ;;  %v421_v16 = vadd.f32 %v2618_v9, %v382_v0  ;;  %v2708_v15 = vand.u32 4294967280, %v2288_v5  ;;  %v1457_v5 = vld [vmem:[%s2947_s3 + $0x18] sm:$0xff] }
 0x2bc   :  { %v336_v21 = vpop.permute.xlu1 %335 }
 0x2bd   :  { %v453_v25 = vmax.f32 %v421_v16, 0.0  ;;  %v384_v33 = vmul.f32 %v2610_v3, %v336_v21  ;;  %2181 = vmatpush1.bf16.msra.mxu1 %v2180_v13  ;;  %vm1101_vm1 = vcmp.eq.s32.totalorder %v1067_v60, %v2708_v15  ;;  %v1459_v13 = vld [vmem:[%s2947_s3 + $0x28] sm:$0xff]  ;;  %v1069_v16 = vand.u32 4294967280, %v2321_v46 }
 0x2be   :  { %2182 = vmatprep.subr.bf16.mxu1 %v2245_v52  ;;  %v2199_v21 = vpack.c.bf16 %v1459_v13, %v1458_v12  ;;  %vm1107_vm13 = vcmp.eq.s32.totalorder %v1070_v41, %v2708_v15  ;;  %v1071_v46 = vand.u32 4294967280, %v2343_v59  ;;  %vm1111_vm15 = vcmp.eq.s32.totalorder %v1072_v51, %v2708_v15 }
 0x2bf   :  { %v2183_v8 = vpack.c.bf16 %v453_v25, %v452_v20  ;;  %v423_v29 = vadd.f32 %v2618_v9, %v384_v33  ;;  %vm1105_vm12 = vcmp.eq.s32.totalorder %v1069_v16, %v2708_v15  ;;  %vm1113_vm0 = vcmp.eq.s32.totalorder %v1073_v43, %v2708_v15  ;;  %v1460_v43 = vld [vmem:[%s2947_s3 + $0x30] sm:$0xff] }
 0x2c0   :  { %v347_v35 = vpop.permute.xlu1 %346  ;;  %vm1109_vm14 = vcmp.eq.s32.totalorder %v1071_v46, %v2708_v15  ;;  %v1077_v60 = vand.u32 4294967280, %v2418_v32  ;;  %v1082_v12 = vand.u32 4294967280, %v2471_v56  ;;  %v2775_v16 = vand.u32 4294967280, %v2303_v18 }
 0x2c1   :  { %v455_v45 = vmax.f32 %v423_v29, 0.0  ;;  %v386_v55 = vmul.f32 %v2610_v3, %v347_v35  ;;  %2184 = vmatpush1.bf16.msra.mxu1 %v2183_v8  ;;  %v1068_v3 = vand.u32 4294967280, %v2293_v6  ;;  %v1087_v46 = vand.u32 4294967280, %v2514_v14 }
 0x2c2   :  { %2185 = vmatprep.subr.bf16.mxu1 %v2245_v52  ;;  %vm1121_vm5 = vcmp.eq.s32.totalorder %v1077_v60, %v2708_v15  ;;  %vm1131_vm10 = vcmp.eq.s32.totalorder %v1082_v12, %v2708_v15 }
 0x2c3   :  { %v2186_v48 = vpack.c.bf16 %v455_v45, %v454_v39  ;;  %v425_v62 = vadd.f32 %v2618_v9, %v386_v55  ;;  %v1454_v9 = vld [vmem:[%s2947_s3] sm:$0xff]  ;;  %vm1103_vm11 = vcmp.eq.s32.totalorder %v1068_v3, %v2708_v15  ;;  %v1074_v55 = vand.u32 4294967280, %v2385_v17 }
 0x2c4   :  { %v2191_v27 = vpack.c.bf16 %v1455_v31, %v1454_v9  ;;  %v1078_v9 = vand.u32 4294967280, %v2428_v36 }
 0x2c5   :  { %v457_v53 = vmax.f32 %v425_v62, 0.0  ;;  %2187 = vmatpush1.bf16.msra.mxu1 %v2186_v48  ;;  %vm1115_vm2 = vcmp.eq.s32.totalorder %v1074_v55, %v2708_v15  ;;  %v1075_v62 = vand.u32 4294967280, %v2396_v23 }
 0x2c6   :  { %2188 = vmatprep.subr.bf16.mxu1 %v2245_v52  ;;  %v1456_v52 = vld [vmem:[%s2947_s3 + $0x10] sm:$0xff]  ;;  %2192 = vmatprep.subr.bf16.mxu0 %v2191_v27  ;;  %vm1123_vm6 = vcmp.eq.s32.totalorder %v1078_v9, %v2708_v15  ;;  %v1096_v9 = vand.u32 4294967280, %v2586_v54 }
 0x2c7   :  { %v2189_v57 = vpack.c.bf16 %v457_v53, %v456_v37  ;;  %v2195_v6 = vpack.c.bf16 %v1457_v5, %v1456_v52  ;;  %2194 = vmatpush3.bf16.msra.mxu0 %v2191_v27  ;;  %vm1117_vm3 = vcmp.eq.s32.totalorder %v1075_v62, %v2708_v15  ;;  %v1076_v53 = vand.u32 4294967280, %v2407_v28 }
 0x2c8   :  { %v1079_v52 = vand.u32 4294967280, %v2438_v40  ;;  %v1080_v27 = vand.u32 4294967280, %v2449_v44 }
 0x2c9   :  { %2190 = vmatpush1.bf16.msra.mxu1 %v2189_v57  ;;  %2196 = vmatprep.subr.bf16.mxu0 %v2195_v6  ;;  %vm1119_vm4 = vcmp.eq.s32.totalorder %v1076_v53, %v2708_v15  ;;  %v1093_v53 = vand.u32 4294967280, %v2562_v38 }
 0x2ca   :  { %vm1125_vm7 = vcmp.eq.s32.totalorder %v1079_v52, %v2708_v15  ;;  %vm1127_vm8 = vcmp.eq.s32.totalorder %v1080_v27, %v2708_v15 }
 0x2cb   :  { %2198 = vmatpush3.bf16.msra.mxu0 %v2195_v6 }
 0x2cc   :  { %2200 = vmatprep.subr.bf16.mxu0 %v2199_v21 }
 0x2cf   :  { %2202 = vmatpush3.bf16.msra.mxu0 %v2199_v21 }
 0x2d7   :  { %v876_v4 = vpop.f32.mrb[2].mxu0 }
 0x2d8   :  { %v878_v0 = vpop.f32.mrb[3].mxu0  ;;  %1951 = vmatmul.mubr.msk.f32.vlgmr.msra.gmra.mrb[4].mxu1 %vm1101_vm1, %v876_v4 }
 0x2d9   :  { %1298 = vmatprep.mubr.f32.mxu1 %v2243_v2  ;;  %v1081_v0 = vand.u32 4294967280, %v2460_v50  ;;  %v1083_v50 = vand.u32 4294967280, %v2482_v61  ;;  %v1086_v61 = vand.u32 4294967280, %v2506_v10 }
 0x2db   :  { %v882_v20 = vpop.f32.mrb[4].mxu0  ;;  %vm1129_vm9 = vcmp.eq.s32.totalorder %v1081_v0, %v2708_v15  ;;  %vm1134_vm1 = vcmp.eq.s32.totalorder %v1083_v50, %v2775_v16  ;;  %v1085_v15 = vand.u32 4294967280, %v2498_v7 }
 0x2dc   :  { %v884_v24 = vpop.f32.mrb[5].mxu0  ;;  %1952 = vmatmul.mubr.msk.f32.gmra.mrb[6].mxu1 %vm1103_vm11, %v882_v20 }
 0x2dd   :  { %1303 = vmatprep.mubr.f32.mxu1 %v2243_v2  ;;  %v1084_v24 = vand.u32 4294967280, %v2490_v63 }
 0x2df   :  { %v888_v25 = vpop.f32.mrb[6].mxu0  ;;  %vm1136_vm11 = vcmp.eq.s32.totalorder %v1084_v24, %v2775_v16 }
 0x2e0   :  { %v890_v33 = vpop.f32.mrb[7].mxu0  ;;  %1953 = vmatmul.mubr.msk.f32.gmra.mrb[8].mxu1 %vm1105_vm12, %v888_v25  ;;  %vm1138_vm12 = vcmp.eq.s32.totalorder %v1085_v15, %v2775_v16 }
 0x2e1   :  { %1308 = vmatprep.mubr.f32.mxu1 %v2243_v2 }
 0x2e3   :  { %v894_v8 = vpop.f32.mrb[8].mxu0 }
 0x2e4   :  { %v896_v29 = vpop.f32.mrb[9].mxu0  ;;  %1954 = vmatmul.mubr.msk.f32.gmra.mrb[10].mxu1 %vm1107_vm13, %v894_v8  ;;  %vm1140_vm13 = vcmp.eq.s32.totalorder %v1086_v61, %v2775_v16 }
 0x2e5   :  { %1313 = vmatprep.mubr.f32.mxu1 %v2243_v2  ;;  %v1088_v29 = vand.u32 4294967280, %v2522_v19 }
 0x2e7   :  { %v900_v35 = vpop.f32.mrb[10].mxu0 }
 0x2e8   :  { %v902_v39 = vpop.f32.mrb[11].mxu0  ;;  %1955 = vmatmul.mubr.msk.f32.gmra.mrb[12].mxu1 %vm1109_vm14, %v900_v35  ;;  %vm1142_vm14 = vcmp.eq.s32.totalorder %v1087_v46, %v2775_v16  ;;  %v1089_v35 = vand.u32 4294967280, %v2530_v22 }
 0x2e9   :  { %1318 = vmatprep.mubr.f32.mxu1 %v2243_v2 }
 0x2eb   :  { %v906_v59 = vpop.f32.mrb[12].mxu0 }
 0x2ec   :  { %v908_v45 = vpop.f32.mrb[13].mxu0  ;;  %1956 = vmatmul.mubr.msk.f32.gmra.mrb[14].mxu1 %vm1111_vm15, %v906_v59  ;;  %vm1144_vm15 = vcmp.eq.s32.totalorder %v1088_v29, %v2775_v16  ;;  %v1461_v59 = vld [vmem:[%s2947_s3 + $0x38] sm:$0xff] }
 0x2ed   :  { %1323 = vmatprep.mubr.f32.mxu1 %v2243_v2  ;;  %v2203_v19 = vpack.c.bf16 %v1461_v59, %v1460_v43  ;;  %v1090_v45 = vand.u32 4294967280, %v2538_v26  ;;  %v1092_v26 = vand.u32 4294967280, %v2554_v34 }
 0x2ef   :  { %v912_v48 = vpop.f32.mrb[14].mxu0  ;;  %2204 = vmatprep.subr.bf16.mxu0 %v2203_v19 }
 0x2f0   :  { %v914_v1 = vpop.f32.mrb[15].mxu0  ;;  %1957 = vmatmul.mubr.msk.f32.gmra.mrb[16].mxu1 %vm1113_vm0, %v912_v48  ;;  %vm1146_vm0 = vcmp.eq.s32.totalorder %v1089_v35, %v2775_v16  ;;  %2206 = vmatpush3.bf16.msra.mxu0 %v2203_v19  ;;  %v1091_v48 = vand.u32 4294967280, %v2546_v30 }
 0x2f1   :  { %1328 = vmatprep.mubr.f32.mxu1 %v2243_v2 }
 0x2f3   :  { %v918_v37 = vpop.f32.mrb[16].mxu0 }
 0x2f4   :  { %v920_v11 = vpop.f32.mrb[17].mxu0  ;;  %1958 = vmatmul.mubr.msk.f32.gmra.mrb[18].mxu1 %vm1115_vm2, %v918_v37  ;;  %vm1148_vm2 = vcmp.eq.s32.totalorder %v1090_v45, %v2775_v16 }
 0x2f5   :  { %1333 = vmatprep.mubr.f32.mxu1 %v2243_v2 }
 0x2f7   :  { %v924_v57 = vpop.f32.mrb[18].mxu0 }
 0x2f8   :  { %v926_v17 = vpop.f32.mrb[19].mxu0  ;;  %1959 = vmatmul.mubr.msk.f32.gmra.mrb[20].mxu1 %vm1117_vm3, %v924_v57  ;;  %vm1150_vm3 = vcmp.eq.s32.totalorder %v1091_v48, %v2775_v16 }
 0x2f9   :  { %1338 = vmatprep.mubr.f32.mxu1 %v2243_v2  ;;  %v1094_v17 = vand.u32 4294967280, %v2570_v42 }
 0x2fb   :  { %v930_v3 = vpop.f32.mrb[20].mxu0 }
 0x2fc   :  { %v932_v23 = vpop.f32.mrb[21].mxu0  ;;  %1960 = vmatmul.mubr.msk.f32.gmra.mrb[22].mxu1 %vm1119_vm4, %v930_v3  ;;  %vm1152_vm4 = vcmp.eq.s32.totalorder %v1092_v26, %v2775_v16  ;;  %v1095_v3 = vand.u32 4294967280, %v2578_v47 }
 0x2fd   :  { %1343 = vmatprep.mubr.f32.mxu1 %v2243_v2 }
 0x2ff   :  { %v936_v31 = vpop.f32.mrb[22].mxu0 }
 0x300   :  { %v938_v28 = vpop.f32.mrb[23].mxu0  ;;  %1961 = vmatmul.mubr.msk.f32.gmra.mrb[24].mxu1 %vm1121_vm5, %v936_v31  ;;  %vm1154_vm5 = vcmp.eq.s32.totalorder %v1093_v53, %v2775_v16 }
 0x301   :  { %1348 = vmatprep.mubr.f32.mxu1 %v2243_v2  ;;  %v1097_v28 = vand.u32 4294967280, %v2594_v58 }
 0x303   :  { %v942_v4 = vpop.f32.mrb[24].mxu0 }
 0x304   :  { %v944_v32 = vpop.f32.mrb[25].mxu0  ;;  %1962 = vmatmul.mubr.msk.f32.gmra.mrb[26].mxu1 %vm1123_vm6, %v942_v4  ;;  %vm1156_vm6 = vcmp.eq.s32.totalorder %v1094_v17, %v2775_v16  ;;  %v1098_v4 = vand.u32 4294967280, %v2602_v49 }
 0x305   :  { %1353 = vmatprep.mubr.f32.mxu1 %v2243_v2 }
 0x307   :  { %v948_v5 = vpop.f32.mrb[26].mxu0 }
 0x308   :  { %v950_v36 = vpop.f32.mrb[27].mxu0  ;;  %1963 = vmatmul.mubr.msk.f32.gmra.mrb[28].mxu1 %vm1125_vm7, %v948_v5  ;;  %vm1158_vm7 = vcmp.eq.s32.totalorder %v1095_v3, %v2775_v16 }
 0x309   :  { %1358 = vmatprep.mubr.f32.mxu1 %v2243_v2 }
 0x30b   :  { %v954_v6 = vpop.f32.mrb[28].mxu0 }
 0x30c   :  { %v956_v40 = vpop.f32.mrb[29].mxu0  ;;  %1964 = vmatmul.mubr.msk.f32.gmra.mrb[30].mxu1 %vm1127_vm8, %v954_v6  ;;  %vm1160_vm8 = vcmp.eq.s32.totalorder %v1096_v9, %v2775_v16 }
 0x30d   :  { %1363 = vmatprep.mubr.f32.mxu1 %v2243_v2 }
 0x30f   :  { %v960_v13 = vpop.f32.mrb[30].mxu0 }
 0x310   :  { %v962_v44 = vpop.f32.mrb[31].mxu0  ;;  %1965 = vmatmul.mubr.msk.f32.gmra.mrb[32].mxu1 %vm1129_vm9, %v960_v13  ;;  %vm1162_vm9 = vcmp.eq.s32.totalorder %v1097_v28, %v2775_v16 }
 0x311   :  { %1368 = vmatprep.mubr.f32.mxu1 %v2243_v2 }
 0x313   :  { %v966_v20 = vpop.f32.mrb[32].mxu0 }
 0x314   :  { %v968_v21 = vpop.f32.mrb[33].mxu0  ;;  %1966 = vmatmul.mubr.msk.f32.gmra.mrb[34].mxu1 %vm1131_vm10, %v966_v20  ;;  %vm1164_vm10 = vcmp.eq.s32.totalorder %v1098_v4, %v2775_v16 }
 0x317   :  { %v972_v56 = vpop.f32.mrb[34].mxu0 }
 0x318   :  { %v974_v41 = vpop.f32.mrb[35].mxu0 }
 0x319   :  { %1967 = vmatprep.mubr.msk.f32.mxu1 %vm1134_vm1, %v974_v41  ;;  %vm1469_vm1 = vcmask 523264  }
 0x31a   :  { %1374 = vmatmul.mubr.f32.gmra.mrb[36].mxu1 %v2243_v2 }
 0x31b   :  { %v978_v18 = vpop.f32.mrb[36].mxu0 }
 0x31c   :  { %v980_v25 = vpop.f32.mrb[37].mxu0 }
 0x31d   :  { %1968 = vmatprep.mubr.msk.f32.mxu1 %vm1136_vm11, %v980_v25 }
 0x31e   :  { %1379 = vmatmul.mubr.f32.gmra.mrb[38].mxu1 %v2243_v2 }
 0x31f   :  { %v984_v33 = vpop.f32.mrb[38].mxu0 }
 0x320   :  { %v986_v63 = vpop.f32.mrb[39].mxu0 }
 0x321   :  { %1969 = vmatprep.mubr.msk.f32.mxu1 %vm1138_vm12, %v986_v63 }
 0x322   :  { %1384 = vmatmul.mubr.f32.gmra.mrb[40].mxu1 %v2243_v2 }
 0x323   :  { %v990_v8 = vpop.f32.mrb[40].mxu0 }
 0x324   :  { %v992_v7 = vpop.f32.mrb[41].mxu0 }
 0x325   :  { %1970 = vmatprep.mubr.msk.f32.mxu1 %vm1140_vm13, %v992_v7 }
 0x326   :  { %1389 = vmatmul.mubr.f32.gmra.mrb[42].mxu1 %v2243_v2 }
 0x327   :  { %v996_v51 = vpop.f32.mrb[42].mxu0 }
 0x328   :  { %v998_v10 = vpop.f32.mrb[43].mxu0 }
 0x329   :  { %1971 = vmatprep.mubr.msk.f32.mxu1 %vm1142_vm14, %v998_v10 }
 0x32a   :  { %1394 = vmatmul.mubr.f32.gmra.mrb[44].mxu1 %v2243_v2 }
 0x32b   :  { %v1002_v39 = vpop.f32.mrb[44].mxu0 }
 0x32c   :  { %v1004_v14 = vpop.f32.mrb[45].mxu0 }
 0x32d   :  { %1972 = vmatprep.mubr.msk.f32.mxu1 %vm1144_vm15, %v1004_v14 }
 0x32e   :  { %1399 = vmatmul.mubr.f32.gmra.mrb[46].mxu1 %v2243_v2 }
 0x32f   :  { %v1008_v55 = vpop.f32.mrb[46].mxu0 }
 0x330   :  { %v1010_v22 = vpop.f32.mrb[47].mxu0 }
 0x331   :  { %1973 = vmatprep.mubr.msk.f32.mxu1 %vm1146_vm0, %v1010_v22 }
 0x332   :  { %1404 = vmatmul.mubr.f32.gmra.mrb[48].mxu1 %v2243_v2 }
 0x333   :  { %v1014_v1 = vpop.f32.mrb[48].mxu0 }
 0x334   :  { %v1016_v62 = vpop.f32.mrb[49].mxu0 }
 0x335   :  { %1974 = vmatprep.mubr.msk.f32.mxu1 %vm1148_vm2, %v1016_v62 }
 0x336   :  { %1409 = vmatmul.mubr.f32.gmra.mrb[50].mxu1 %v2243_v2 }
 0x337   :  { %v1020_v37 = vpop.f32.mrb[50].mxu0 }
 0x338   :  { %v1022_v11 = vpop.f32.mrb[51].mxu0 }
 0x339   :  { %1975 = vmatprep.mubr.msk.f32.mxu1 %vm1150_vm3, %v1022_v11 }
 0x33a   :  { %1414 = vmatmul.mubr.f32.gmra.mrb[52].mxu1 %v2243_v2 }
 0x33b   :  { %v1026_v57 = vpop.f32.mrb[52].mxu0 }
 0x33c   :  { %v1028_v30 = vpop.f32.mrb[53].mxu0 }
 0x33d   :  { %1976 = vmatprep.mubr.msk.f32.mxu1 %vm1152_vm4, %v1028_v30 }
 0x33e   :  { %1419 = vmatmul.mubr.f32.gmra.mrb[54].mxu1 %v2243_v2 }
 0x33f   :  { %v1032_v60 = vpop.f32.mrb[54].mxu0 }
 0x340   :  { %v1034_v34 = vpop.f32.mrb[55].mxu0 }
 0x341   :  { %1977 = vmatprep.mubr.msk.f32.mxu1 %vm1154_vm5, %v1034_v34 }
 0x342   :  { %1424 = vmatmul.mubr.f32.gmra.mrb[56].mxu1 %v2243_v2 }
 0x343   :  { %v1038_v23 = vpop.f32.mrb[56].mxu0 }
 0x344   :  { %v1040_v38 = vpop.f32.mrb[57].mxu0 }
 0x345   :  { %1978 = vmatprep.mubr.msk.f32.mxu1 %vm1156_vm6, %v1040_v38 }
 0x346   :  { %1429 = vmatmul.mubr.f32.gmra.mrb[58].mxu1 %v2243_v2 }
 0x347   :  { %v1044_v31 = vpop.f32.mrb[58].mxu0 }
 0x348   :  { %v1046_v42 = vpop.f32.mrb[59].mxu0 }
 0x349   :  { %1979 = vmatprep.mubr.msk.f32.mxu1 %vm1158_vm7, %v1046_v42 }
 0x34a   :  { %1434 = vmatmul.mubr.f32.gmra.mrb[60].mxu1 %v2243_v2 }
 0x34b   :  { %v1050_v52 = vpop.f32.mrb[60].mxu0 }
 0x34c   :  { %v1052_v47 = vpop.f32.mrb[61].mxu0 }
 0x34d   :  { %1980 = vmatprep.mubr.msk.f32.mxu1 %vm1160_vm8, %v1052_v47 }
 0x34e   :  { %1439 = vmatmul.mubr.f32.gmra.mrb[62].mxu1 %v2243_v2 }
 0x34f   :  { %v1056_v32 = vpop.f32.mrb[62].mxu0 }
 0x350   :  { %v1058_v54 = vpop.f32.mrb[63].mxu0 }
 0x351   :  { %1981 = vmatprep.mubr.msk.f32.mxu1 %vm1162_vm9, %v1058_v54 }
 0x352   :  { %1444 = vmatmul.mubr.f32.gmra.mrb[64].mxu1 %v2243_v2 }
 0x353   :  { %v1062_v27 = vpop.f32.mrb[64].mxu0 }
 0x354   :  { %v1064_v5 = vpop.f32.mrb[65].mxu0 }
 0x355   :  { %1982 = vmatprep.mubr.msk.f32.mxu1 %vm1164_vm10, %v1064_v5 }
 0x356   :  { %1449 = vmatmul.mubr.f32.gmra.mrb[66].mxu1 %v2243_v2 }
 0x3ab   :  { %v1295_v58 = vpop.f32.mrb[4].mxu1 }
 0x3ac   :  { %v1297_v36 = vpop.f32.mrb[5].mxu1  ;;  %2083 = vmatprep.mubr.msk.f32.mxu0 %vm1469_vm1, %v1295_v58  ;;  %v2866_v58 = vld [vmem:[%s2948_s4] ss:$0 sm:$0xff]  ;;  %s2246_s4 = smov [#allocation2]  }
 0x3ad   :  { %s1860_s15 = sshll.u32 %s2246_s4, 4  ;;  %s1861_s15 = int_to_ptr.vmem [resolvable:$true] %s1860_s15 }
 0x3ae   :  { %s2219_s16 = scalar_lea.vmem %s1861_s15, 4096  ;;  %p2224_p1 = scmp.lt.s32.totalorder %s1861_s15, %s1861_s15 }
 0x3af   :  { %v1300_v0 = vpop.f32.mrb[6].mxu1  ;;  %p2220_p0 = scmp.ne.s32.totalorder %s1861_s15, %s2219_s16  ;;  %p2225_p2 = scmp.lt.s32.totalorder %s2219_s16, %s2219_s16 }
 0x3b0   :  { %v1302_v6 = vpop.f32.mrb[7].mxu1  ;;  %2084 = vmatmul.mubr.msk.f32.vlgmr.msra.gmra.mrb[66].mxu0 %vm1469_vm1, %v1300_v0 }
 0x3b1   :  { %p2226_p3 = por %p2225_p2, %p2224_p1 }
 0x3b3   :  { %v1305_v49 = vpop.f32.mrb[8].mxu1  ;;  %p2227_p4 = pnand %p2226_p3, %p2220_p0 }
 0x3b4   :  { %v1307_v40 = vpop.f32.mrb[9].mxu1  ;;  %2086 = vmatprep.mubr.msk.f32.mxu0 %vm1469_vm1, %v1305_v49 }
 0x3b7   :  { %v1310_v12 = vpop.f32.mrb[10].mxu1 }
 0x3b8   :  { %v1312_v13 = vpop.f32.mrb[11].mxu1  ;;  %2087 = vmatmul.mubr.msk.f32.gmra.mrb[68].mxu0 %vm1469_vm1, %v1310_v12 }
 0x3bb   :  { %v1315_v44 = vpop.f32.mrb[12].mxu1 }
 0x3bc   :  { %v1317_v16 = vpop.f32.mrb[13].mxu1  ;;  %2089 = vmatprep.mubr.msk.f32.mxu0 %vm1469_vm1, %v1315_v44 }
 0x3bf   :  { %v1320_v2 = vpop.f32.mrb[14].mxu1 }
 0x3c0   :  { %v1322_v50 = vpop.f32.mrb[15].mxu1  ;;  %2090 = vmatmul.mubr.msk.f32.gmra.mrb[70].mxu0 %vm1469_vm1, %v1320_v2 }
 0x3c3   :  { %v1325_v20 = vpop.f32.mrb[16].mxu1 }
 0x3c4   :  { %v1327_v21 = vpop.f32.mrb[17].mxu1  ;;  %2092 = vmatprep.mubr.msk.f32.mxu0 %vm1469_vm1, %v1325_v20 }
 0x3c7   :  { %v1330_v24 = vpop.f32.mrb[18].mxu1 }
 0x3c8   :  { %v1332_v56 = vpop.f32.mrb[19].mxu1  ;;  %2093 = vmatmul.mubr.msk.f32.gmra.mrb[72].mxu0 %vm1469_vm1, %v1330_v24 }
 0x3cb   :  { %v1335_v41 = vpop.f32.mrb[20].mxu1 }
 0x3cc   :  { %v1337_v15 = vpop.f32.mrb[21].mxu1  ;;  %2095 = vmatprep.mubr.msk.f32.mxu0 %vm1469_vm1, %v1335_v41 }
 0x3cf   :  { %v1340_v18 = vpop.f32.mrb[22].mxu1 }
 0x3d0   :  { %v1342_v25 = vpop.f32.mrb[23].mxu1  ;;  %2096 = vmatmul.mubr.msk.f32.gmra.mrb[74].mxu0 %vm1469_vm1, %v1340_v18 }
 0x3d3   :  { %v1345_v61 = vpop.f32.mrb[24].mxu1 }
 0x3d4   :  { %v1347_v33 = vpop.f32.mrb[25].mxu1  ;;  %2098 = vmatprep.mubr.msk.f32.mxu0 %vm1469_vm1, %v1345_v61 }
 0x3d7   :  { %v1350_v63 = vpop.f32.mrb[26].mxu1 }
 0x3d8   :  { %v1352_v46 = vpop.f32.mrb[27].mxu1  ;;  %2099 = vmatmul.mubr.msk.f32.gmra.mrb[76].mxu0 %vm1469_vm1, %v1350_v63 }
 0x3db   :  { %v1355_v8 = vpop.f32.mrb[28].mxu1 }
 0x3dc   :  { %v1357_v7 = vpop.f32.mrb[29].mxu1  ;;  %2101 = vmatprep.mubr.msk.f32.mxu0 %vm1469_vm1, %v1355_v8 }
 0x3df   :  { %v1360_v29 = vpop.f32.mrb[30].mxu1 }
 0x3e0   :  { %v1362_v51 = vpop.f32.mrb[31].mxu1  ;;  %2102 = vmatmul.mubr.msk.f32.gmra.mrb[78].mxu0 %vm1469_vm1, %v1360_v29 }
 0x3e3   :  { %v1365_v10 = vpop.f32.mrb[32].mxu1 }
 0x3e4   :  { %v1367_v35 = vpop.f32.mrb[33].mxu1  ;;  %2104 = vmatprep.mubr.msk.f32.mxu0 %vm1469_vm1, %v1365_v10 }
 0x3e7   :  { %v1370_v39 = vpop.f32.mrb[34].mxu1 }
 0x3e8   :  { %v1372_v14 = vpop.f32.mrb[35].mxu1  ;;  %2105 = vmatmul.mubr.msk.f32.gmra.mrb[80].mxu0 %vm1469_vm1, %v1370_v39 }
 0x3ed   :  { %v1375_v43 = vpop.f32.mrb[36].mxu1 }
 0x3ee   :  { %v1377_v59 = vpop.f32.mrb[37].mxu1  ;;  %2107 = vmatprep.mubr.msk.f32.mxu0 %vm1469_vm1, %v1375_v43 }
 0x3f1   :  { %v1380_v19 = vpop.f32.mrb[38].mxu1 }
 0x3f2   :  { %v1382_v45 = vpop.f32.mrb[39].mxu1  ;;  %2108 = vmatmul.mubr.msk.f32.gmra.mrb[82].mxu0 %vm1469_vm1, %v1380_v19 }
 0x3f5   :  { %v1385_v55 = vpop.f32.mrb[40].mxu1 }
 0x3f6   :  { %v1387_v22 = vpop.f32.mrb[41].mxu1  ;;  %2110 = vmatprep.mubr.msk.f32.mxu0 %vm1469_vm1, %v1385_v55 }
 0x3f9   :  { %v1390_v48 = vpop.f32.mrb[42].mxu1 }
 0x3fa   :  { %v1392_v1 = vpop.f32.mrb[43].mxu1  ;;  %2111 = vmatmul.mubr.msk.f32.gmra.mrb[84].mxu0 %vm1469_vm1, %v1390_v48 }
 0x3fd   :  { %v1395_v62 = vpop.f32.mrb[44].mxu1 }
 0x3fe   :  { %v1397_v26 = vpop.f32.mrb[45].mxu1  ;;  %2113 = vmatprep.mubr.msk.f32.mxu0 %vm1469_vm1, %v1395_v62 }
 0x401   :  { %v1400_v37 = vpop.f32.mrb[46].mxu1 }
 0x402   :  { %v1402_v11 = vpop.f32.mrb[47].mxu1  ;;  %2114 = vmatmul.mubr.msk.f32.gmra.mrb[86].mxu0 %vm1469_vm1, %v1400_v37 }
 0x405   :  { %v1405_v53 = vpop.f32.mrb[48].mxu1 }
 0x406   :  { %v1407_v57 = vpop.f32.mrb[49].mxu1  ;;  %2116 = vmatprep.mubr.msk.f32.mxu0 %vm1469_vm1, %v1405_v53 }
 0x409   :  { %v1410_v30 = vpop.f32.mrb[50].mxu1 }
 0x40a   :  { %v1412_v17 = vpop.f32.mrb[51].mxu1  ;;  %2117 = vmatmul.mubr.msk.f32.gmra.mrb[88].mxu0 %vm1469_vm1, %v1410_v30 }
 0x40d   :  { %v1415_v60 = vpop.f32.mrb[52].mxu1 }
 0x40e   :  { %v1417_v34 = vpop.f32.mrb[53].mxu1  ;;  %2119 = vmatprep.mubr.msk.f32.mxu0 %vm1469_vm1, %v1415_v60 }
 0x411   :  { %v1420_v3 = vpop.f32.mrb[54].mxu1 }
 0x412   :  { %v1422_v23 = vpop.f32.mrb[55].mxu1  ;;  %2120 = vmatmul.mubr.msk.f32.gmra.mrb[90].mxu0 %vm1469_vm1, %v1420_v3 }
 0x415   :  { %v1425_v38 = vpop.f32.mrb[56].mxu1 }
 0x416   :  { %v1427_v9 = vpop.f32.mrb[57].mxu1  ;;  %2122 = vmatprep.mubr.msk.f32.mxu0 %vm1469_vm1, %v1425_v38 }
 0x419   :  { %v1430_v31 = vpop.f32.mrb[58].mxu1 }
 0x41a   :  { %v1432_v42 = vpop.f32.mrb[59].mxu1  ;;  %2123 = vmatmul.mubr.msk.f32.gmra.mrb[92].mxu0 %vm1469_vm1, %v1430_v31 }
 0x41d   :  { %v1435_v28 = vpop.f32.mrb[60].mxu1 }
 0x41e   :  { %v1437_v52 = vpop.f32.mrb[61].mxu1  ;;  %2125 = vmatprep.mubr.msk.f32.mxu0 %vm1469_vm1, %v1435_v28 }
 0x421   :  { %v1440_v47 = vpop.f32.mrb[62].mxu1 }
 0x422   :  { %v1442_v4 = vpop.f32.mrb[63].mxu1  ;;  %2126 = vmatmul.mubr.msk.f32.gmra.mrb[94].mxu0 %vm1469_vm1, %v1440_v47 }
 0x425   :  { %v1445_v32 = vpop.f32.mrb[64].mxu1 }
 0x426   :  { %v1447_v54 = vpop.f32.mrb[65].mxu1  ;;  %2128 = vmatprep.mubr.msk.f32.mxu0 %vm1469_vm1, %v1445_v32 }
 0x429   :  { %v1450_v27 = vpop.f32.mrb[66].mxu1 }
 0x42a   :  { %v1452_v5 = vpop.f32.mrb[67].mxu1  ;;  %2129 = vmatmul.mubr.msk.f32.gmra.mrb[96].mxu0 %vm1469_vm1, %v1450_v27 }
 0x483   :  { %v2085_v36 = vpop.f32.mrb[66].mxu0 }
 0x484   :  { %v1638_v0 = vadd.f32 %v2085_v36, %v2866_v58  ;;  %v1632_v6 = vpop.f32.mrb[67].mxu0 }
 0x485   :  { %v1633_v49 = vadd.f32 %v2866_v58, %v1632_v6 }
 0x486   :  { %v1792_v40 = vmax.f32 %v1638_v0, 0.0 }
 0x487   :  { %v1791_v12 = vmax.f32 %v1633_v49, 0.0 }
 0x488   :  { %1824 = vst.msk [vmem:[#allocation2 + $0x8] sm:$0xff] %vm1469_vm1, %v1792_v40 }
 0x489   :  { %1823 = vst.msk [vmem:[#allocation2] sm:$0xff] %vm1469_vm1, %v1791_v12 }
 0x48b   :  { %v2088_v13 = vpop.f32.mrb[68].mxu0 }
 0x48c   :  { %v1648_v44 = vadd.f32 %v2088_v13, %v2866_v58  ;;  %v1642_v16 = vpop.f32.mrb[69].mxu0 }
 0x48d   :  { %v1643_v2 = vadd.f32 %v2866_v58, %v1642_v16 }
 0x48e   :  { %v1794_v50 = vmax.f32 %v1648_v44, 0.0 }
 0x48f   :  { %v1793_v20 = vmax.f32 %v1643_v2, 0.0 }
 0x490   :  { %1826 = vst.msk [vmem:[#allocation2 + $0x18] sm:$0xff] %vm1469_vm1, %v1794_v50 }
 0x491   :  { %1825 = vst.msk [vmem:[#allocation2 + $0x10] sm:$0xff] %vm1469_vm1, %v1793_v20 }
 0x493   :  { %v2091_v21 = vpop.f32.mrb[70].mxu0 }
 0x494   :  { %v1658_v24 = vadd.f32 %v2091_v21, %v2866_v58  ;;  %v1652_v56 = vpop.f32.mrb[71].mxu0 }
 0x495   :  { %v1653_v41 = vadd.f32 %v2866_v58, %v1652_v56 }
 0x496   :  { %v1796_v15 = vmax.f32 %v1658_v24, 0.0 }
 0x497   :  { %v1795_v18 = vmax.f32 %v1653_v41, 0.0 }
 0x498   :  { %1828 = vst.msk [vmem:[#allocation2 + $0x28] sm:$0xff] %vm1469_vm1, %v1796_v15 }
 0x499   :  { %1827 = vst.msk [vmem:[#allocation2 + $0x20] sm:$0xff] %vm1469_vm1, %v1795_v18 }
 0x49b   :  { %v2094_v25 = vpop.f32.mrb[72].mxu0 }
 0x49c   :  { %v1668_v61 = vadd.f32 %v2094_v25, %v2866_v58  ;;  %v1662_v33 = vpop.f32.mrb[73].mxu0 }
 0x49d   :  { %v1663_v63 = vadd.f32 %v2866_v58, %v1662_v33 }
 0x49e   :  { %v1798_v46 = vmax.f32 %v1668_v61, 0.0 }
 0x49f   :  { %v1797_v8 = vmax.f32 %v1663_v63, 0.0 }
 0x4a0   :  { %1830 = vst.msk [vmem:[#allocation2 + $0x38] sm:$0xff] %vm1469_vm1, %v1798_v46 }
 0x4a1   :  { %1829 = vst.msk [vmem:[#allocation2 + $0x30] sm:$0xff] %vm1469_vm1, %v1797_v8 }
 0x4a3   :  { %v2097_v7 = vpop.f32.mrb[74].mxu0 }
 0x4a4   :  { %v1678_v29 = vadd.f32 %v2097_v7, %v2866_v58  ;;  %v1672_v51 = vpop.f32.mrb[75].mxu0 }
 0x4a5   :  { %v1673_v10 = vadd.f32 %v2866_v58, %v1672_v51 }
 0x4a6   :  { %v1800_v35 = vmax.f32 %v1678_v29, 0.0 }
 0x4a7   :  { %v1799_v39 = vmax.f32 %v1673_v10, 0.0 }
 0x4a8   :  { %1832 = vst.msk [vmem:[#allocation2 + $0x48] sm:$0xff] %vm1469_vm1, %v1800_v35 }
 0x4a9   :  { %1831 = vst.msk [vmem:[#allocation2 + $0x40] sm:$0xff] %vm1469_vm1, %v1799_v39 }
 0x4ab   :  { %v2100_v14 = vpop.f32.mrb[76].mxu0 }
 0x4ac   :  { %v1688_v43 = vadd.f32 %v2100_v14, %v2866_v58  ;;  %v1682_v59 = vpop.f32.mrb[77].mxu0 }
 0x4ad   :  { %v1683_v19 = vadd.f32 %v2866_v58, %v1682_v59 }
 0x4ae   :  { %v1802_v45 = vmax.f32 %v1688_v43, 0.0 }
 0x4af   :  { %v1801_v55 = vmax.f32 %v1683_v19, 0.0 }
 0x4b0   :  { %1834 = vst.msk [vmem:[#allocation2 + $0x58] sm:$0xff] %vm1469_vm1, %v1802_v45 }
 0x4b1   :  { %1833 = vst.msk [vmem:[#allocation2 + $0x50] sm:$0xff] %vm1469_vm1, %v1801_v55 }
 0x4b3   :  { %v2103_v22 = vpop.f32.mrb[78].mxu0 }
 0x4b4   :  { %v1698_v48 = vadd.f32 %v2103_v22, %v2866_v58  ;;  %v1692_v1 = vpop.f32.mrb[79].mxu0 }
 0x4b5   :  { %v1693_v62 = vadd.f32 %v2866_v58, %v1692_v1 }
 0x4b6   :  { %v1804_v26 = vmax.f32 %v1698_v48, 0.0 }
 0x4b7   :  { %v1803_v37 = vmax.f32 %v1693_v62, 0.0 }
 0x4b8   :  { %1836 = vst.msk [vmem:[#allocation2 + $0x68] sm:$0xff] %vm1469_vm1, %v1804_v26 }
 0x4b9   :  { %1835 = vst.msk [vmem:[#allocation2 + $0x60] sm:$0xff] %vm1469_vm1, %v1803_v37 }
 0x4bb   :  { %v2106_v11 = vpop.f32.mrb[80].mxu0 }
 0x4bc   :  { %v1708_v53 = vadd.f32 %v2106_v11, %v2866_v58  ;;  %v1702_v57 = vpop.f32.mrb[81].mxu0 }
 0x4bd   :  { %v1703_v30 = vadd.f32 %v2866_v58, %v1702_v57 }
 0x4be   :  { %v1806_v17 = vmax.f32 %v1708_v53, 0.0 }
 0x4bf   :  { %v1805_v60 = vmax.f32 %v1703_v30, 0.0 }
 0x4c0   :  { %1838 = vst.msk [vmem:[#allocation2 + $0x78] sm:$0xff] %vm1469_vm1, %v1806_v17 }
 0x4c1   :  { %1837 = vst.msk [vmem:[#allocation2 + $0x70] sm:$0xff] %vm1469_vm1, %v1805_v60 }
 0x4c5   :  { %v2109_v34 = vpop.f32.mrb[82].mxu0 }
 0x4c6   :  { %v1718_v3 = vadd.f32 %v2109_v34, %v2866_v58  ;;  %v1712_v23 = vpop.f32.mrb[83].mxu0 }
 0x4c7   :  { %v1713_v38 = vadd.f32 %v2866_v58, %v1712_v23 }
 0x4c8   :  { %v1808_v9 = vmax.f32 %v1718_v3, 0.0 }
 0x4c9   :  { %v1807_v31 = vmax.f32 %v1713_v38, 0.0 }
 0x4ca   :  { %1840 = vst.msk [vmem:[#allocation2 + $0x88] sm:$0xff] %vm1469_vm1, %v1808_v9 }
 0x4cb   :  { %1839 = vst.msk [vmem:[#allocation2 + $0x80] sm:$0xff] %vm1469_vm1, %v1807_v31 }
 0x4cd   :  { %v2112_v42 = vpop.f32.mrb[84].mxu0 }
 0x4ce   :  { %v1728_v28 = vadd.f32 %v2112_v42, %v2866_v58  ;;  %v1722_v52 = vpop.f32.mrb[85].mxu0 }
 0x4cf   :  { %v1723_v47 = vadd.f32 %v2866_v58, %v1722_v52 }
 0x4d0   :  { %v1810_v4 = vmax.f32 %v1728_v28, 0.0 }
 0x4d1   :  { %v1809_v32 = vmax.f32 %v1723_v47, 0.0 }
 0x4d2   :  { %1842 = vst.msk [vmem:[#allocation2 + $0x98] sm:$0xff] %vm1469_vm1, %v1810_v4 }
 0x4d3   :  { %1841 = vst.msk [vmem:[#allocation2 + $0x90] sm:$0xff] %vm1469_vm1, %v1809_v32 }
 0x4d5   :  { %v2115_v54 = vpop.f32.mrb[86].mxu0 }
 0x4d6   :  { %v1738_v27 = vadd.f32 %v2115_v54, %v2866_v58  ;;  %v1732_v5 = vpop.f32.mrb[87].mxu0 }
 0x4d7   :  { %v1733_v36 = vadd.f32 %v2866_v58, %v1732_v5 }
 0x4d8   :  { %v1812_v0 = vmax.f32 %v1738_v27, 0.0 }
 0x4d9   :  { %v1811_v6 = vmax.f32 %v1733_v36, 0.0 }
 0x4da   :  { %1844 = vst.msk [vmem:[#allocation2 + $0xa8] sm:$0xff] %vm1469_vm1, %v1812_v0 }
 0x4db   :  { %1843 = vst.msk [vmem:[#allocation2 + $0xa0] sm:$0xff] %vm1469_vm1, %v1811_v6 }
 0x4dd   :  { %v2118_v49 = vpop.f32.mrb[88].mxu0 }
 0x4de   :  { %v1748_v40 = vadd.f32 %v2118_v49, %v2866_v58  ;;  %v1742_v12 = vpop.f32.mrb[89].mxu0 }
 0x4df   :  { %v1743_v13 = vadd.f32 %v2866_v58, %v1742_v12 }
 0x4e0   :  { %v1814_v44 = vmax.f32 %v1748_v40, 0.0 }
 0x4e1   :  { %v1813_v16 = vmax.f32 %v1743_v13, 0.0 }
 0x4e2   :  { %1846 = vst.msk [vmem:[#allocation2 + $0xb8] sm:$0xff] %vm1469_vm1, %v1814_v44 }
 0x4e3   :  { %1845 = vst.msk [vmem:[#allocation2 + $0xb0] sm:$0xff] %vm1469_vm1, %v1813_v16 }
 0x4e5   :  { %v2121_v2 = vpop.f32.mrb[90].mxu0 }
 0x4e6   :  { %v1758_v50 = vadd.f32 %v2121_v2, %v2866_v58  ;;  %v1752_v20 = vpop.f32.mrb[91].mxu0 }
 0x4e7   :  { %v1753_v21 = vadd.f32 %v2866_v58, %v1752_v20 }
 0x4e8   :  { %v1816_v24 = vmax.f32 %v1758_v50, 0.0 }
 0x4e9   :  { %v1815_v56 = vmax.f32 %v1753_v21, 0.0 }
 0x4ea   :  { %1848 = vst.msk [vmem:[#allocation2 + $0xc8] sm:$0xff] %vm1469_vm1, %v1816_v24 }
 0x4eb   :  { %1847 = vst.msk [vmem:[#allocation2 + $0xc0] sm:$0xff] %vm1469_vm1, %v1815_v56 }
 0x4ed   :  { %v2124_v41 = vpop.f32.mrb[92].mxu0 }
 0x4ee   :  { %v1768_v15 = vadd.f32 %v2124_v41, %v2866_v58  ;;  %v1762_v18 = vpop.f32.mrb[93].mxu0 }
 0x4ef   :  { %v1763_v25 = vadd.f32 %v2866_v58, %v1762_v18 }
 0x4f0   :  { %v1818_v61 = vmax.f32 %v1768_v15, 0.0 }
 0x4f1   :  { %v1817_v33 = vmax.f32 %v1763_v25, 0.0 }
 0x4f2   :  { %1850 = vst.msk [vmem:[#allocation2 + $0xd8] sm:$0xff] %vm1469_vm1, %v1818_v61 }
 0x4f3   :  { %1849 = vst.msk [vmem:[#allocation2 + $0xd0] sm:$0xff] %vm1469_vm1, %v1817_v33 }
 0x4f5   :  { %v2127_v63 = vpop.f32.mrb[94].mxu0 }
 0x4f6   :  { %v1778_v46 = vadd.f32 %v2127_v63, %v2866_v58  ;;  %v1772_v8 = vpop.f32.mrb[95].mxu0 }
 0x4f7   :  { %v1773_v7 = vadd.f32 %v2866_v58, %v1772_v8 }
 0x4f8   :  { %v1820_v29 = vmax.f32 %v1778_v46, 0.0 }
 0x4f9   :  { %v1819_v51 = vmax.f32 %v1773_v7, 0.0 }
 0x4fa   :  { %1852 = vst.msk [vmem:[#allocation2 + $0xe8] sm:$0xff] %vm1469_vm1, %v1820_v29 }
 0x4fb   :  { %1851 = vst.msk [vmem:[#allocation2 + $0xe0] sm:$0xff] %vm1469_vm1, %v1819_v51 }
 0x4fd   :  { %v2130_v10 = vpop.f32.mrb[96].mxu0 }
 0x4fe   :  { %v1788_v35 = vadd.f32 %v2130_v10, %v2866_v58  ;;  %v1782_v39 = vpop.f32.mrb[97].mxu0 }
 0x4ff   :  { %v1783_v14 = vadd.f32 %v2866_v58, %v1782_v39 }
 0x500   :  { %v1822_v43 = vmax.f32 %v1788_v35, 0.0 }
 0x501   :  { %v1821_v59 = vmax.f32 %v1783_v14, 0.0 }
 0x502   :  { %1854 = vst.msk [vmem:[#allocation2 + $0xf8] sm:$0xff] %vm1469_vm1, %v1822_v43 }
 0x503   :  { %1853 = vst.msk [vmem:[#allocation2 + $0xf0] sm:$0xff] %vm1469_vm1, %v1821_v59 }
 0x504   :  { %2230 = shalt.err (!%p2227_p4)
}
 0x505   :  { %s2231_s19 = scalar_lea.hbm %s2949_s5, 4096 }
 0x506   :  { %p2232_p5 = scmp.ne.s32.totalorder %s2949_s5, %s2231_s19  ;;  %p2235_p6 = scmp.lt.u32.totalorder %s2231_s19, %s2949_s5 }
 0x508   :  { %p2237_p7 = pnand %p2235_p6, %p2232_p5 }
 0x50a   :  { %2240 = shalt.err (!%p2237_p7)
}
 0x50b   :  { %s2247_s23 = smov 128   ;;  %s2248_s24 = smov 8  }
 0x50c   :  { %1866 = dma.vmem_to_hbm [thread:$0]  %s1861_s15, 4096, %s2949_s5, [#allocation3], %s2247_s23, %s2247_s23, %s2248_s24  }
 0x50d   :  { %2241 = dma.done.wait [#allocation3], 4096  }
 0x50e   :  { %2242 = vsyncadd [#allocation3], 4294963200 }
 0x50f   :  { %1870 = vsyncpa [#allocation3], 1 }

</bundles_post_ra>
